<compile_context>
chip_gen: v6e
topology: v6e:2x2x1
jax: 0.10.0
libtpu: 0.0.40
codegen_flags: <defaults>
</compile_context>

<pallas_src>
import jax
import jax.numpy as jnp
from jax.experimental import pallas as pl
from jax.experimental.pallas import tpu as pltpu

HIGHEST = jax.lax.Precision.HIGHEST


def _rnn_kernel(x_ref, wih_ref, whh_ref, b_ref, wfc_ref, bfc_ref, o_ref):
    B, T, I = x_ref.shape
    H = whh_ref.shape[0]

    x = x_ref[...]        # (B, T, I) batch_first, no wrapper relayout
    wih = wih_ref[...]    # (I, H)
    whh = whh_ref[...]    # (H, H)  resident across the whole recurrence
    b = b_ref[...]        # (1, H)  pre-summed b_ih + b_hh

    # Hoisted input projection (+ fused bias) for every timestep.  These T
    # small 2-D matmuls depend only on x / W_ih (not on h), so they sit off
    # the serial recurrence chain and the scheduler overlaps them with it.
    px = [
        jnp.dot(x[:, t, :], wih,
                preferred_element_type=jnp.float32, precision=HIGHEST) + b
        for t in range(T)
    ]

    # Statically unrolled recurrence (T is small and compile-time known);
    # only  h @ W_hh^T -> add -> tanh  remains on the serial critical path.
    h = jnp.zeros((B, H), jnp.float32)
    for t in range(T):
        h = jnp.tanh(px[t] + jnp.dot(h, whh,
                                     preferred_element_type=jnp.float32,
                                     precision=HIGHEST))

    # Final Linear on the last hidden state only.
    o_ref[...] = (jnp.dot(h, wfc_ref[...],
                          preferred_element_type=jnp.float32,
                          precision=HIGHEST)
                  + bfc_ref[...]).astype(o_ref.dtype)


def rnn_forward(x, w_ih, w_hh, b_ih, b_hh, w_fc, b_fc):
    """x: (B, T, I) batch_first. Returns (B, O)."""
    B, T, I = x.shape
    H = w_hh.shape[0]
    O = w_fc.shape[0]

    # Tiny weight prep (pre-transpose + pre-summed bias).  x is passed through
    # untouched — no relayout HLO on the activation path.
    wih_t = w_ih.T                         # (I, H)
    whh_t = w_hh.T                         # (H, H)
    wfc_t = w_fc.T                         # (H, O)
    bias = (b_ih + b_hh).reshape(1, H)     # fused RNN bias
    bfc = b_fc.reshape(1, O)

    vmem = pl.BlockSpec(memory_space=pltpu.MemorySpace.VMEM)
    return pl.pallas_call(
        _rnn_kernel,
        out_shape=jax.ShapeDtypeStruct((B, O), x.dtype),
        in_specs=[vmem] * 6,
        out_specs=vmem,
    )(x, wih_t, whh_t, bias, wfc_t, bfc)


def rnn_reference(x, w_ih, w_hh, b_ih, b_hh, w_fc, b_fc):
    """Pure-JAX reference matching torch.nn.RNN(tanh, batch_first) + Linear."""
    B, T, I = x.shape
    H = w_hh.shape[0]
    h = jnp.zeros((B, H), jnp.float32)
    for t in range(T):
        h = jnp.tanh(jnp.dot(x[:, t, :], w_ih.T, precision=HIGHEST) + b_ih
                     + jnp.dot(h, w_hh.T, precision=HIGHEST) + b_hh)
    return jnp.dot(h, w_fc.T, precision=HIGHEST) + b_fc


if __name__ == "__main__":
    # small shapes consistent with the module's forward
    B, T = 8, 8
    input_size, hidden_size, output_size = 4, 32, 1

    key = jax.random.PRNGKey(0)
    ks = jax.random.split(key, 8)
    # deterministic init mimicking PyTorch's uniform(-1/sqrt(H), 1/sqrt(H))
    bound = 1.0 / jnp.sqrt(jnp.float32(hidden_size))
    u = lambda k, shape: jax.random.uniform(k, shape, jnp.float32, -bound, bound)

    x = jax.random.normal(ks[0], (B, T, input_size), jnp.float32)
    w_ih = u(ks[1], (hidden_size, input_size))
    w_hh = u(ks[2], (hidden_size, hidden_size))
    b_ih = u(ks[3], (hidden_size,))
    b_hh = u(ks[4], (hidden_size,))
    w_fc = u(ks[5], (output_size, hidden_size))
    b_fc = u(ks[6], (output_size,))

    out = rnn_forward(x, w_ih, w_hh, b_ih, b_hh, w_fc, b_fc)
    out = jax.block_until_ready(out)

    ref = rnn_reference(x, w_ih, w_hh, b_ih, b_hh, w_fc, b_fc)
    assert out.shape == (B, output_size)
    assert jnp.allclose(out, ref, atol=1e-5, rtol=1e-5), (out, ref)

    print("KERNEL_OK")
</pallas_src>

<mosaic_0001>
module attributes {stable_mosaic.version = 11 : i64} {
  func.func @_rnn_kernel(%arg0: memref<8x8x4xf32, #tpu.memory_space<vmem>>, %arg1: memref<4x32xf32, #tpu.memory_space<vmem>>, %arg2: memref<32x32xf32, #tpu.memory_space<vmem>>, %arg3: memref<1x32xf32, #tpu.memory_space<vmem>>, %arg4: memref<32x1xf32, #tpu.memory_space<vmem>>, %arg5: memref<1x1xf32, #tpu.memory_space<vmem>>, %arg6: memref<8x1xf32, #tpu.memory_space<vmem>>) attributes {dimension_semantics = [], scalar_prefetch = 0 : i64, scratch_operands = 0 : i64, tpu.core_type = #tpu.core_type<tc>} {
    %c0 = arith.constant 0 : index
    %c0_0 = arith.constant 0 : index
    %c0_1 = arith.constant 0 : index
    %0 = vector.load %arg0[%c0, %c0_0, %c0_1] : memref<8x8x4xf32, #tpu.memory_space<vmem>>, vector<8x8x4xf32>
    %c0_2 = arith.constant 0 : index
    %c0_3 = arith.constant 0 : index
    %1 = vector.load %arg1[%c0_2, %c0_3] : memref<4x32xf32, #tpu.memory_space<vmem>>, vector<4x32xf32>
    %c0_4 = arith.constant 0 : index
    %c0_5 = arith.constant 0 : index
    %2 = vector.load %arg2[%c0_4, %c0_5] : memref<32x32xf32, #tpu.memory_space<vmem>>, vector<32x32xf32>
    %c0_6 = arith.constant 0 : index
    %c0_7 = arith.constant 0 : index
    %3 = vector.load %arg3[%c0_6, %c0_7] : memref<1x32xf32, #tpu.memory_space<vmem>>, vector<1x32xf32>
    %4 = vector.extract_strided_slice %0 {offsets = [0, 0, 0], sizes = [8, 1, 4], strides = [1, 1, 1]} : vector<8x8x4xf32> to vector<8x1x4xf32>
    %5 = vector.shape_cast %4 : vector<8x1x4xf32> to vector<8x4xf32>
    %cst = arith.constant dense<0.000000e+00> : vector<8x32xf32>
    %6 = tpu.matmul %5, %1, %cst {dimension_numbers = #tpu.dot_dimension_numbers<[1], [0], [0], [1], [0, 0, 1, 1], [], []>, precision = #tpu.contract_precision<fp32>} : vector<8x4xf32>, vector<4x32xf32>, vector<8x32xf32> -> vector<8x32xf32>
    %7 = vector.broadcast %3 : vector<1x32xf32> to vector<8x32xf32>
    %8 = arith.addf %6, %7 : vector<8x32xf32>
    %9 = vector.extract_strided_slice %0 {offsets = [0, 1, 0], sizes = [8, 1, 4], strides = [1, 1, 1]} : vector<8x8x4xf32> to vector<8x1x4xf32>
    %10 = vector.shape_cast %9 : vector<8x1x4xf32> to vector<8x4xf32>
    %cst_8 = arith.constant dense<0.000000e+00> : vector<8x32xf32>
    %11 = tpu.matmul %10, %1, %cst_8 {dimension_numbers = #tpu.dot_dimension_numbers<[1], [0], [0], [1], [0, 0, 1, 1], [], []>, precision = #tpu.contract_precision<fp32>} : vector<8x4xf32>, vector<4x32xf32>, vector<8x32xf32> -> vector<8x32xf32>
    %12 = vector.broadcast %3 : vector<1x32xf32> to vector<8x32xf32>
    %13 = arith.addf %11, %12 : vector<8x32xf32>
    %14 = vector.extract_strided_slice %0 {offsets = [0, 2, 0], sizes = [8, 1, 4], strides = [1, 1, 1]} : vector<8x8x4xf32> to vector<8x1x4xf32>
    %15 = vector.shape_cast %14 : vector<8x1x4xf32> to vector<8x4xf32>
    %cst_9 = arith.constant dense<0.000000e+00> : vector<8x32xf32>
    %16 = tpu.matmul %15, %1, %cst_9 {dimension_numbers = #tpu.dot_dimension_numbers<[1], [0], [0], [1], [0, 0, 1, 1], [], []>, precision = #tpu.contract_precision<fp32>} : vector<8x4xf32>, vector<4x32xf32>, vector<8x32xf32> -> vector<8x32xf32>
    %17 = vector.broadcast %3 : vector<1x32xf32> to vector<8x32xf32>
    %18 = arith.addf %16, %17 : vector<8x32xf32>
    %19 = vector.extract_strided_slice %0 {offsets = [0, 3, 0], sizes = [8, 1, 4], strides = [1, 1, 1]} : vector<8x8x4xf32> to vector<8x1x4xf32>
    %20 = vector.shape_cast %19 : vector<8x1x4xf32> to vector<8x4xf32>
    %cst_10 = arith.constant dense<0.000000e+00> : vector<8x32xf32>
    %21 = tpu.matmul %20, %1, %cst_10 {dimension_numbers = #tpu.dot_dimension_numbers<[1], [0], [0], [1], [0, 0, 1, 1], [], []>, precision = #tpu.contract_precision<fp32>} : vector<8x4xf32>, vector<4x32xf32>, vector<8x32xf32> -> vector<8x32xf32>
    %22 = vector.broadcast %3 : vector<1x32xf32> to vector<8x32xf32>
    %23 = arith.addf %21, %22 : vector<8x32xf32>
    %24 = vector.extract_strided_slice %0 {offsets = [0, 4, 0], sizes = [8, 1, 4], strides = [1, 1, 1]} : vector<8x8x4xf32> to vector<8x1x4xf32>
    %25 = vector.shape_cast %24 : vector<8x1x4xf32> to vector<8x4xf32>
    %cst_11 = arith.constant dense<0.000000e+00> : vector<8x32xf32>
    %26 = tpu.matmul %25, %1, %cst_11 {dimension_numbers = #tpu.dot_dimension_numbers<[1], [0], [0], [1], [0, 0, 1, 1], [], []>, precision = #tpu.contract_precision<fp32>} : vector<8x4xf32>, vector<4x32xf32>, vector<8x32xf32> -> vector<8x32xf32>
    %27 = vector.broadcast %3 : vector<1x32xf32> to vector<8x32xf32>
    %28 = arith.addf %26, %27 : vector<8x32xf32>
    %29 = vector.extract_strided_slice %0 {offsets = [0, 5, 0], sizes = [8, 1, 4], strides = [1, 1, 1]} : vector<8x8x4xf32> to vector<8x1x4xf32>
    %30 = vector.shape_cast %29 : vector<8x1x4xf32> to vector<8x4xf32>
    %cst_12 = arith.constant dense<0.000000e+00> : vector<8x32xf32>
    %31 = tpu.matmul %30, %1, %cst_12 {dimension_numbers = #tpu.dot_dimension_numbers<[1], [0], [0], [1], [0, 0, 1, 1], [], []>, precision = #tpu.contract_precision<fp32>} : vector<8x4xf32>, vector<4x32xf32>, vector<8x32xf32> -> vector<8x32xf32>
    %32 = vector.broadcast %3 : vector<1x32xf32> to vector<8x32xf32>
    %33 = arith.addf %31, %32 : vector<8x32xf32>
    %34 = vector.extract_strided_slice %0 {offsets = [0, 6, 0], sizes = [8, 1, 4], strides = [1, 1, 1]} : vector<8x8x4xf32> to vector<8x1x4xf32>
    %35 = vector.shape_cast %34 : vector<8x1x4xf32> to vector<8x4xf32>
    %cst_13 = arith.constant dense<0.000000e+00> : vector<8x32xf32>
    %36 = tpu.matmul %35, %1, %cst_13 {dimension_numbers = #tpu.dot_dimension_numbers<[1], [0], [0], [1], [0, 0, 1, 1], [], []>, precision = #tpu.contract_precision<fp32>} : vector<8x4xf32>, vector<4x32xf32>, vector<8x32xf32> -> vector<8x32xf32>
    %37 = vector.broadcast %3 : vector<1x32xf32> to vector<8x32xf32>
    %38 = arith.addf %36, %37 : vector<8x32xf32>
    %39 = vector.extract_strided_slice %0 {offsets = [0, 7, 0], sizes = [8, 1, 4], strides = [1, 1, 1]} : vector<8x8x4xf32> to vector<8x1x4xf32>
    %40 = vector.shape_cast %39 : vector<8x1x4xf32> to vector<8x4xf32>
    %cst_14 = arith.constant dense<0.000000e+00> : vector<8x32xf32>
    %41 = tpu.matmul %40, %1, %cst_14 {dimension_numbers = #tpu.dot_dimension_numbers<[1], [0], [0], [1], [0, 0, 1, 1], [], []>, precision = #tpu.contract_precision<fp32>} : vector<8x4xf32>, vector<4x32xf32>, vector<8x32xf32> -> vector<8x32xf32>
    %42 = vector.broadcast %3 : vector<1x32xf32> to vector<8x32xf32>
    %43 = arith.addf %41, %42 : vector<8x32xf32>
    %cst_15 = arith.constant 0.000000e+00 : f32
    %44 = vector.broadcast %cst_15 : f32 to vector<8x32xf32>
    %cst_16 = arith.constant dense<0.000000e+00> : vector<8x32xf32>
    %45 = tpu.matmul %44, %2, %cst_16 {dimension_numbers = #tpu.dot_dimension_numbers<[1], [0], [0], [1], [0, 0, 1, 1], [], []>, precision = #tpu.contract_precision<fp32>} : vector<8x32xf32>, vector<32x32xf32>, vector<8x32xf32> -> vector<8x32xf32>
    %46 = arith.addf %8, %45 : vector<8x32xf32>
    %47 = math.tanh %46 : vector<8x32xf32>
    %cst_17 = arith.constant dense<0.000000e+00> : vector<8x32xf32>
    %48 = tpu.matmul %47, %2, %cst_17 {dimension_numbers = #tpu.dot_dimension_numbers<[1], [0], [0], [1], [0, 0, 1, 1], [], []>, precision = #tpu.contract_precision<fp32>} : vector<8x32xf32>, vector<32x32xf32>, vector<8x32xf32> -> vector<8x32xf32>
    %49 = arith.addf %13, %48 : vector<8x32xf32>
    %50 = math.tanh %49 : vector<8x32xf32>
    %cst_18 = arith.constant dense<0.000000e+00> : vector<8x32xf32>
    %51 = tpu.matmul %50, %2, %cst_18 {dimension_numbers = #tpu.dot_dimension_numbers<[1], [0], [0], [1], [0, 0, 1, 1], [], []>, precision = #tpu.contract_precision<fp32>} : vector<8x32xf32>, vector<32x32xf32>, vector<8x32xf32> -> vector<8x32xf32>
    %52 = arith.addf %18, %51 : vector<8x32xf32>
    %53 = math.tanh %52 : vector<8x32xf32>
    %cst_19 = arith.constant dense<0.000000e+00> : vector<8x32xf32>
    %54 = tpu.matmul %53, %2, %cst_19 {dimension_numbers = #tpu.dot_dimension_numbers<[1], [0], [0], [1], [0, 0, 1, 1], [], []>, precision = #tpu.contract_precision<fp32>} : vector<8x32xf32>, vector<32x32xf32>, vector<8x32xf32> -> vector<8x32xf32>
    %55 = arith.addf %23, %54 : vector<8x32xf32>
    %56 = math.tanh %55 : vector<8x32xf32>
    %cst_20 = arith.constant dense<0.000000e+00> : vector<8x32xf32>
    %57 = tpu.matmul %56, %2, %cst_20 {dimension_numbers = #tpu.dot_dimension_numbers<[1], [0], [0], [1], [0, 0, 1, 1], [], []>, precision = #tpu.contract_precision<fp32>} : vector<8x32xf32>, vector<32x32xf32>, vector<8x32xf32> -> vector<8x32xf32>
    %58 = arith.addf %28, %57 : vector<8x32xf32>
    %59 = math.tanh %58 : vector<8x32xf32>
    %cst_21 = arith.constant dense<0.000000e+00> : vector<8x32xf32>
    %60 = tpu.matmul %59, %2, %cst_21 {dimension_numbers = #tpu.dot_dimension_numbers<[1], [0], [0], [1], [0, 0, 1, 1], [], []>, precision = #tpu.contract_precision<fp32>} : vector<8x32xf32>, vector<32x32xf32>, vector<8x32xf32> -> vector<8x32xf32>
    %61 = arith.addf %33, %60 : vector<8x32xf32>
    %62 = math.tanh %61 : vector<8x32xf32>
    %cst_22 = arith.constant dense<0.000000e+00> : vector<8x32xf32>
    %63 = tpu.matmul %62, %2, %cst_22 {dimension_numbers = #tpu.dot_dimension_numbers<[1], [0], [0], [1], [0, 0, 1, 1], [], []>, precision = #tpu.contract_precision<fp32>} : vector<8x32xf32>, vector<32x32xf32>, vector<8x32xf32> -> vector<8x32xf32>
    %64 = arith.addf %38, %63 : vector<8x32xf32>
    %65 = math.tanh %64 : vector<8x32xf32>
    %cst_23 = arith.constant dense<0.000000e+00> : vector<8x32xf32>
    %66 = tpu.matmul %65, %2, %cst_23 {dimension_numbers = #tpu.dot_dimension_numbers<[1], [0], [0], [1], [0, 0, 1, 1], [], []>, precision = #tpu.contract_precision<fp32>} : vector<8x32xf32>, vector<32x32xf32>, vector<8x32xf32> -> vector<8x32xf32>
    %67 = arith.addf %43, %66 : vector<8x32xf32>
    %68 = math.tanh %67 : vector<8x32xf32>
    %c0_24 = arith.constant 0 : index
    %c0_25 = arith.constant 0 : index
    %69 = vector.load %arg4[%c0_24, %c0_25] : memref<32x1xf32, #tpu.memory_space<vmem>>, vector<32x1xf32>
    %cst_26 = arith.constant dense<0.000000e+00> : vector<8x1xf32>
    %70 = tpu.matmul %68, %69, %cst_26 {dimension_numbers = #tpu.dot_dimension_numbers<[1], [0], [0], [1], [0, 0, 1, 1], [], []>, precision = #tpu.contract_precision<fp32>} : vector<8x32xf32>, vector<32x1xf32>, vector<8x1xf32> -> vector<8x1xf32>
    %c0_27 = arith.constant 0 : index
    %c0_28 = arith.constant 0 : index
    %71 = vector.load %arg5[%c0_27, %c0_28] : memref<1x1xf32, #tpu.memory_space<vmem>>, vector<1x1xf32>
    %72 = vector.broadcast %71 : vector<1x1xf32> to vector<8x1xf32>
    %73 = arith.addf %70, %72 : vector<8x1xf32>
    %c0_29 = arith.constant 0 : index
    %c0_30 = arith.constant 0 : index
    %74 = vector.load %arg6[%c0_29, %c0_30] : memref<8x1xf32, #tpu.memory_space<vmem>>, vector<8x1xf32>
    tpu.vector_store %arg6[%c0_29, %c0_30], %73 {strides = array<i32>} : memref<8x1xf32, #tpu.memory_space<vmem>>, vector<8x1xf32>,
    return
  }
}

</mosaic_0001>

<bundles_post_ra>
// kernel: tpu_custom_call.1
= control target key start
LH: loop header
LB: loop body
LE: loop exit
PB: predicated region body
PF: predicated region fallthrough
CT: control target
= control target key end

     0   :  { %vm77_vm0 = vcmask 1043456   ;;  %vm54_vm1 = vcmask 1041409   ;;  %v9407_v0 = vmov 0.0   ;;  %vm57_vm2 = vcmask 1042434   ;;  %s10590_s1 = inlined_call_operand.vmem [shape: f32[4,32], index: 1, kind: input, shape index: {}]   ;;  %s10591_s0 = inlined_call_operand.vmem [shape: f32[8,8,4], index: 0, kind: input, shape index: {}]   ;;  %s10592_s2 = inlined_call_operand.vmem [shape: f32[32,32], index: 2, kind: input, shape index: {}]   ;;  %s10593_s3 = inlined_call_operand.vmem [shape: f32[1,32], index: 3, kind: input, shape index: {}]   ;;  %s10594_s4 = inlined_call_operand.vmem [shape: f32[32,1], index: 4, kind: input, shape index: {}]   ;;  %s10595_s5 = inlined_call_operand.<no memory space> [shape: f32[1,1], index: 5, kind: input, shape index: {}]   ;;  %s10596_s6 = inlined_call_operand.vmem [shape: f32[8,1], index: 6, kind: output, shape index: {}]  }
   0x1   :  { %8555 = vmatprep.subr.mxu0 %v9407_v0  ;;  %v33_v1 = vld [vmem:[%s10590_s1] sm:$0xf]  ;;  %8560 = vmatprep.subr.mxu1 %v9407_v0  ;;  %v9457_v3 = vld [vmem:[%s10591_s0 + $0x8] sm:$0xff]  ;;  %vm60_vm3 = vcmask 1043459   ;;  %vm9408_vm4 = vmmov 0   ;;  %v9466_v5 = vld [vmem:[%s10591_s0 + $0x10] sm:$0xff] }
   0x2   :  { %v9452_v2 = vld [vmem:[%s10591_s0] sm:$0xff]  ;;  %v79_v4 = vsel %vm77_vm0, %v33_v1, 0  ;;  %8557 = vmatprep.mubr.msk.f32.mxu0 %vm9408_vm4, %v9407_v0  ;;  %8562 = vmatprep.mubr.msk.f32.mxu1 %vm9408_vm4, %v9407_v0  ;;  %v9471_v6 = vld [vmem:[%s10591_s0 + $0x18] sm:$0xff]  ;;  %v53_v8 = vrot.slane %v9457_v3, 7  ;;  %vm63_vm5 = vcmask 1044484   ;;  %v9484_v10 = vld [vmem:[%s10591_s0 + $0x28] sm:$0xff] }
   0x3   :  { %v9476_v7 = vld [vmem:[%s10591_s0 + $0x20] sm:$0xff]  ;;  %v9479_v9 = vand.u32 4294901760, %v79_v4  ;;  %v9489_v11 = vld [vmem:[%s10591_s0 + $0x30] sm:$0xff]  ;;  %v9494_v12 = vld [vmem:[%s10591_s0 + $0x38] sm:$0xff]  ;;  %v56_v13 = vrot.slane %v9466_v5, 6  ;;  %v59_v14 = vrot.slane %v9471_v6, 5 }
   0x4   :  { %v55_v15 = vsel %vm54_vm1, %v53_v8, %v9452_v2  ;;  %v62_v16 = vrot.slane %v9476_v7, 4  ;;  %v65_v17 = vrot.slane %v9484_v10, 3  ;;  %vm66_vm6 = vcmask 1045509  }
   0x5   :  { %8556 = vmatpush3.msra.mxu0 %v9479_v9  ;;  %v9504_v18 = vsub.f32 %v79_v4, %v9479_v9  ;;  %v58_v19 = vsel %vm57_vm2, %v56_v13, %v55_v15  ;;  %v68_v20 = vrot.slane %v9489_v11, 2  ;;  %vm69_vm7 = vcmask 1046534  }
   0x6   :  { %8565 = vmatprep.subr.mxu0 %v9407_v0  ;;  %v61_v21 = vsel %vm60_vm3, %v59_v14, %v58_v19  ;;  %v71_v22 = vrot.slane %v9494_v12, 1  ;;  %vm72_vm8 = vcmask 1047559   ;;  %vm74_vm9 = vcmask 31744  }
   0x7   :  { %v9512_v23 = vand.u32 4294901760, %v9504_v18  ;;  %v64_v24 = vsel %vm63_vm5, %v62_v16, %v61_v21  ;;  %v527_v25 = vrot.slane %v9452_v2, 1  ;;  %v529_v26 = vrot.slane %v9466_v5, 7 }
   0x8   :  { %v67_v27 = vsel %vm66_vm6, %v65_v17, %v64_v24  ;;  %v531_v28 = vrot.slane %v9471_v6, 6  ;;  %v533_v29 = vrot.slane %v9476_v7, 5  ;;  %v535_v30 = vrot.slane %v9484_v10, 4 }
   0x9   :  { %v191_v31 = vsub.f32 %v9504_v18, %v9512_v23  ;;  %v70_v32 = vsel %vm69_vm7, %v68_v20, %v67_v27  ;;  %v528_v33 = vsel %vm54_vm1, %v9457_v3, %v527_v25  ;;  %v537_v34 = vrot.slane %v9489_v11, 3 }
   0xa   :  { %v73_v35 = vsel %vm72_vm8, %v71_v22, %v70_v32  ;;  %v530_v36 = vsel %vm57_vm2, %v529_v26, %v528_v33  ;;  %v539_v37 = vrot.slane %v9494_v12, 2  ;;  %v989_v38 = vrot.slane %v9452_v2, 2 }
   0xb   :  { %v9531_v39 = vand.u32 4294901760, %v191_v31  ;;  %v75_v40 = vsel %vm74_vm9, %v73_v35, 0  ;;  %v532_v41 = vsel %vm60_vm3, %v531_v28, %v530_v36  ;;  %v990_v42 = vrot.slane %v9457_v3, 1 }
   0xc   :  { %v9536_v43 = vand.u32 4294901760, %v75_v40  ;;  %v534_v44 = vsel %vm63_vm5, %v533_v29, %v532_v41  ;;  %v993_v45 = vrot.slane %v9471_v6, 7  ;;  %v995_v46 = vrot.slane %v9476_v7, 6 }
   0xd   :  { %8561 = vmatpush3.msra.mxu1 %v9531_v39  ;;  %v536_v47 = vsel %vm66_vm6, %v535_v30, %v534_v44  ;;  %v991_v48 = vsel %vm54_vm1, %v990_v42, %v989_v38  ;;  %v997_v49 = vrot.slane %v9484_v10, 5  ;;  %v999_v50 = vrot.slane %v9489_v11, 4 }
   0xe   :  { %v148_v51 = vsub.f32 %v75_v40, %v9536_v43  ;;  %8563 = vmatmul.mubr.f32.vlgmr.msra.gmra.mxu1 %v9536_v43  ;;  %8570 = vmatprep.subr.mxu1 %v9407_v0  ;;  %v538_v52 = vsel %vm69_vm7, %v537_v34, %v536_v47  ;;  %v992_v53 = vsel %vm57_vm2, %v9466_v5, %v991_v48  ;;  %v1001_v54 = vrot.slane %v9494_v12, 3 }
   0xf   :  { %8571 = vmatpush3.msra.mxu1 %v9479_v9  ;;  %8572 = vmatprep.mubr.msk.f32.mxu1 %vm9408_vm4, %v9407_v0  ;;  %v540_v55 = vsel %vm72_vm8, %v539_v37, %v538_v52  ;;  %v994_v56 = vsel %vm60_vm3, %v993_v45, %v992_v53  ;;  %v1451_v57 = vrot.slane %v9452_v2, 3  ;;  %v1452_v58 = vrot.slane %v9457_v3, 2 }
  0x10   :  { %v149_v59 = vand.u32 4294901760, %v148_v51  ;;  %8580 = vmatprep.subr.mxu1 %v9407_v0  ;;  %v541_v60 = vsel %vm74_vm9, %v540_v55, 0  ;;  %v996_v61 = vsel %vm63_vm5, %v995_v46, %v994_v56  ;;  %v1454_v62 = vrot.slane %v9466_v5, 1 }
  0x11   :  { %v9564_v63 = vand.u32 4294901760, %v541_v60  ;;  %v998_v1 = vsel %vm66_vm6, %v997_v49, %v996_v61  ;;  %v1453_v4 = vsel %vm54_vm1, %v1452_v58, %v1451_v57  ;;  %v1457_v8 = vrot.slane %v9476_v7, 7 }
  0x12   :  { %v150_v13 = vsub.f32 %v148_v51, %v149_v59  ;;  %8573 = vmatmul.mubr.f32.vlgmr.msra.gmra.mxu1 %v149_v59  ;;  %v1000_v14 = vsel %vm69_vm7, %v999_v50, %v998_v1  ;;  %v1455_v15 = vsel %vm57_vm2, %v1454_v62, %v1453_v4  ;;  %v1459_v20 = vrot.slane %v9484_v10, 6 }
  0x13   :  { %8581 = vmatpush3.msra.mxu1 %v9479_v9  ;;  %8582 = vmatprep.mubr.msk.f32.mxu1 %vm9408_vm4, %v9407_v0  ;;  %v9575_v16 = vsub.f32 %v541_v60, %v9564_v63  ;;  %v1002_v17 = vsel %vm72_vm8, %v1001_v54, %v1000_v14  ;;  %v1456_v19 = vsel %vm60_vm3, %v9471_v6, %v1455_v15  ;;  %v1461_v24 = vrot.slane %v9489_v11, 5 }
  0x14   :  { %v151_v21 = vand.u32 4294901760, %v150_v13  ;;  %8590 = vmatprep.subr.mxu1 %v9407_v0  ;;  %v1458_v22 = vsel %vm63_vm5, %v1457_v8, %v1456_v19  ;;  %v1003_v26 = vsel %vm74_vm9, %v1002_v17, 0  ;;  %v1913_v27 = vrot.slane %v9452_v2, 4 }
  0x15   :  { %v611_v25 = vand.u32 4294901760, %v9575_v16  ;;  %v1914_v28 = vrot.slane %v9457_v3, 3  ;;  %v1460_v29 = vsel %vm66_vm6, %v1459_v20, %v1458_v22  ;;  %v9598_v30 = vand.u32 4294901760, %v1003_v26 }
  0x16   :  { %8558 = vmatmul.mubr.f32.vlgmr.msra.gmra.mxu0 %v151_v21  ;;  %8583 = vmatmul.mubr.f32.vlgmr.msra.gmra.mxu1 %v9536_v43  ;;  %v1463_v31 = vrot.slane %v9494_v12, 4  ;;  %v1916_v32 = vrot.slane %v9466_v5, 2  ;;  %v1462_v34 = vsel %vm69_vm7, %v1461_v24, %v1460_v29  ;;  %v1918_v36 = vrot.slane %v9471_v6, 1 }
  0x17   :  { %8566 = vmatpush3.msra.mxu0 %v9504_v18  ;;  %8567 = vmatprep.mubr.msk.f32.mxu0 %vm9408_vm4, %v9407_v0  ;;  %v612_v33 = vsub.f32 %v9575_v16, %v611_v25  ;;  %v1915_v35 = vsel %vm54_vm1, %v1914_v28, %v1913_v27  ;;  %v9616_v37 = vsub.f32 %v1003_v26, %v9598_v30  ;;  %v2837_v42 = vrot.slane %v9452_v2, 6 }
  0x18   :  { %8575 = vmatprep.subr.mxu0 %v9407_v0  ;;  %8591 = vmatpush3.msra.mxu1 %v9531_v39  ;;  %v1464_v38 = vsel %vm72_vm8, %v1463_v31, %v1462_v34  ;;  %v1917_v40 = vsel %vm57_vm2, %v1916_v32, %v1915_v35  ;;  %v1921_v44 = vrot.slane %v9484_v10, 7  ;;  %v2838_v45 = vrot.slane %v9457_v3, 5 }
  0x19   :  { %8592 = vmatprep.mubr.msk.f32.mxu1 %vm9408_vm4, %v9407_v0  ;;  %8600 = vmatprep.subr.mxu1 %v9407_v0  ;;  %v613_v41 = vand.u32 4294901760, %v612_v33  ;;  %v1465_v46 = vsel %vm74_vm9, %v1464_v38, 0  ;;  %v2840_v47 = vrot.slane %v9466_v5, 4  ;;  %v2842_v48 = vrot.slane %v9471_v6, 3 }
  0x1a   :  { %8568 = vmatmul.mubr.f32.vlgmr.msra.gmra.mxu0 %v148_v51  ;;  %8593 = vmatmul.mubr.f32.vlgmr.msra.gmra.mxu1 %v9564_v63  ;;  %v1073_v49 = vand.u32 4294901760, %v9616_v37  ;;  %v1923_v50 = vrot.slane %v9489_v11, 6  ;;  %v2839_v51 = vsel %vm54_vm1, %v2838_v45, %v2837_v42  ;;  %v2844_v52 = vrot.slane %v9476_v7, 2 }
  0x1b   :  { %8576 = vmatpush3.msra.mxu0 %v9512_v23  ;;  %8577 = vmatprep.mubr.msk.f32.mxu0 %vm9408_vm4, %v9407_v0  ;;  %v2375_v53 = vrot.slane %v9452_v2, 5  ;;  %v2376_v54 = vrot.slane %v9457_v3, 4  ;;  %v2841_v55 = vsel %vm57_vm2, %v2840_v47, %v2839_v51  ;;  %v2846_v56 = vrot.slane %v9484_v10, 1 }
  0x1c   :  { %8585 = vmatprep.subr.mxu0 %v9407_v0  ;;  %8601 = vmatpush3.msra.mxu1 %v9479_v9  ;;  %v2843_v58 = vsel %vm60_vm3, %v2842_v48, %v2841_v55  ;;  %v2849_v59 = vrot.slane %v9494_v12, 7  ;;  %v3299_v60 = vrot.slane %v9452_v2, 7  ;;  %v9655_v61 = vand.u32 4294901760, %v1465_v46 }
  0x1d   :  { %8602 = vmatprep.mubr.msk.f32.mxu1 %vm9408_vm4, %v9407_v0  ;;  %8610 = vmatprep.subr.mxu1 %v9407_v0  ;;  %v2378_v62 = vrot.slane %v9466_v5, 3  ;;  %v2845_v1 = vsel %vm63_vm5, %v2844_v52, %v2843_v58  ;;  %v3300_v4 = vrot.slane %v9457_v3, 6  ;;  %v1074_v8 = vsub.f32 %v9616_v37, %v1073_v49 }
  0x1e   :  { %8578 = vmatmul.mubr.f32.vlgmr.msra.gmra.mxu0 %v9536_v43  ;;  %8603 = vmatmul.mubr.f32.vlgmr.msra.gmra.mxu1 %v611_v25  ;;  %v1919_v43 = vsel %vm60_vm3, %v1918_v36, %v1917_v40  ;;  %v2847_v2 = vsel %vm66_vm6, %v2846_v56, %v2845_v1  ;;  %v3302_v13 = vrot.slane %v9466_v5, 5  ;;  %v3304_v14 = vrot.slane %v9471_v6, 4 }
  0x1f   :  { %8586 = vmatpush3.msra.mxu0 %v9479_v9  ;;  %8587 = vmatprep.mubr.msk.f32.mxu0 %vm9408_vm4, %v9407_v0  ;;  %v1920_v57 = vsel %vm63_vm5, %v9476_v7, %v1919_v43  ;;  %v2377_v3 = vsel %vm54_vm1, %v2376_v54, %v2375_v53  ;;  %v2848_v17 = vsel %vm69_vm7, %v9489_v11, %v2847_v2  ;;  %v3306_v19 = vrot.slane %v9476_v7, 3 }
  0x20   :  { %8595 = vmatprep.subr.mxu0 %v9407_v0  ;;  %8611 = vmatpush3.msra.mxu1 %v9479_v9  ;;  %v1922_v15 = vsel %vm66_vm6, %v1921_v44, %v1920_v57  ;;  %v1925_v5 = vrot.slane %v9494_v12, 5  ;;  %v3301_v20 = vsel %vm54_vm1, %v3300_v4, %v3299_v60  ;;  %v3308_v21 = vrot.slane %v9484_v10, 2 }
  0x21   :  { %8612 = vmatprep.mubr.msk.f32.mxu1 %vm9408_vm4, %v9407_v0  ;;  %8620 = vmatprep.subr.mxu1 %v9407_v0  ;;  %v2380_v22 = vrot.slane %v9471_v6, 2  ;;  %v3303_v25 = vsel %vm57_vm2, %v3302_v13, %v3301_v20  ;;  %v3310_v26 = vrot.slane %v9489_v11, 1  ;;  %v1924_v27 = vsel %vm69_vm7, %v1923_v50, %v1922_v15  ;;  %v35_v13 = vld [vmem:[%s10592_s2 + $0x8] sm:$0xff] }
  0x22   :  { %8588 = vmatmul.mubr.f32.vlgmr.msra.gmra.mxu0 %v613_v41  ;;  %8613 = vmatmul.mubr.f32.vlgmr.msra.gmra.mxu1 %v9564_v63  ;;  %v2379_v28 = vsel %vm57_vm2, %v2378_v62, %v2377_v3  ;;  %v3305_v29 = vsel %vm60_vm3, %v3304_v14, %v3303_v25  ;;  %v1075_v6 = vand.u32 4294901760, %v1074_v8  ;;  %v1534_v31 = vsub.f32 %v1465_v46, %v9655_v61  ;;  %v36_v62 = vld [vmem:[%s10592_s2 + $0x10] sm:$0xff]  ;;  %v34_v3 = vld [vmem:[%s10592_s2] sm:$0xff] }
  0x23   :  { %8596 = vmatpush3.msra.mxu0 %v9504_v18  ;;  %8597 = vmatprep.mubr.msk.f32.mxu0 %vm9408_vm4, %v9407_v0  ;;  %v3307_v32 = vsel %vm63_vm5, %v3306_v19, %v3305_v29  ;;  %v2382_v33 = vrot.slane %v9476_v7, 1  ;;  %v2381_v35 = vsel %vm60_vm3, %v2380_v22, %v2379_v28  ;;  %v2385_v44 = vrot.slane %v9489_v11, 7 }
  0x24   :  { %8605 = vmatprep.subr.mxu0 %v9407_v0  ;;  %8621 = vmatpush3.msra.mxu1 %v9531_v39  ;;  %v3309_v34 = vsel %vm66_vm6, %v3308_v21, %v3307_v32  ;;  %v1535_v38 = vand.u32 4294901760, %v1534_v31  ;;  %v2387_v11 = vrot.slane %v9494_v12, 6  ;;  %v9850_v2 = vand.u32 4294901760, %v36_v62 }
  0x25   :  { %8622 = vmatprep.mubr.msk.f32.mxu1 %vm9408_vm4, %v9407_v0  ;;  %8630 = vmatprep.subr.mxu1 %v9407_v0  ;;  %v3311_v36 = vsel %vm69_vm7, %v3310_v26, %v3309_v34  ;;  %v2383_v42 = vsel %vm63_vm5, %v2382_v33, %v2381_v35  ;;  %v9866_v15 = vand.u32 4294901760, %v35_v13  ;;  %vm3761_vm10 = vcmask 261120  }
  0x26   :  { %8598 = vmatmul.mubr.f32.vlgmr.msra.gmra.mxu0 %v9575_v16  ;;  %8623 = vmatmul.mubr.f32.vlgmr.msra.gmra.mxu1 %v9598_v30  ;;  %v2850_v16 = vsel %vm72_vm8, %v2849_v59, %v2848_v17  ;;  %v3312_v7 = vsel %vm72_vm8, %v9494_v12, %v3311_v36  ;;  %v1536_v45 = vsub.f32 %v1534_v31, %v1535_v38  ;;  %v37_v59 = vld [vmem:[%s10592_s2 + $0x18] sm:$0xff]  ;;  %vm8181_vm11 = vcmask 7168  }
  0x27   :  { %8606 = vmatpush3.msra.mxu0 %v9512_v23  ;;  %8607 = vmatprep.mubr.msk.f32.mxu0 %vm9408_vm4, %v9407_v0  ;;  %v9685_v24 = vsel %vm74_vm9, %v2850_v16, 0  ;;  %v9715_v40 = vsel %vm74_vm9, %v3312_v7, 0  ;;  %v2384_v43 = vsel %vm66_vm6, %v9484_v10, %v2383_v42  ;;  %v9842_v1 = vand.u32 4294901760, %v37_v59 }
  0x28   :  { %8615 = vmatprep.subr.mxu0 %v9407_v0  ;;  %8631 = vmatpush3.msra.mxu1 %v9479_v9  ;;  %v1537_v10 = vand.u32 4294901760, %v1536_v45  ;;  %v9797_v55 = vand.u32 4294901760, %v9685_v24  ;;  %v9873_v19 = vsub.f32 %v36_v62, %v9850_v2  ;;  %v9883_v16 = vand.u32 4294901760, %v34_v3 }
  0x29   :  { %8632 = vmatprep.mubr.msk.f32.mxu1 %vm9408_vm4, %v9407_v0  ;;  %8640 = vmatprep.subr.mxu1 %v9407_v0  ;;  %v9861_v14 = vsub.f32 %v37_v59, %v9842_v1  ;;  %v9889_v20 = vsub.f32 %v35_v13, %v9866_v15 }
  0x2a   :  { %8608 = vmatmul.mubr.f32.vlgmr.msra.gmra.mxu0 %v9564_v63  ;;  %8633 = vmatmul.mubr.f32.vlgmr.msra.gmra.mxu1 %v1073_v49  ;;  %v1926_v63 = vsel %vm72_vm8, %v1925_v5, %v1924_v27  ;;  %v2920_v57 = vsub.f32 %v9685_v24, %v9797_v55  ;;  %v9893_v22 = vand.u32 4294901760, %v9873_v19  ;;  %v9903_v24 = vsub.f32 %v34_v3, %v9883_v16 }
  0x2b   :  { %8616 = vmatpush3.msra.mxu0 %v9479_v9  ;;  %8617 = vmatprep.mubr.msk.f32.mxu0 %vm9408_vm4, %v9407_v0  ;;  %v1927_v41 = vsel %vm74_vm9, %v1926_v63, 0  ;;  %v9881_v5 = vand.u32 4294901760, %v9861_v14  ;;  %v9909_v25 = vand.u32 4294901760, %v9889_v20  ;;  %v10036_v63 = vld [vmem:[%s10593_s3] ss:$0 sm:$0xff] }
  0x2c   :  { %8625 = vmatprep.subr.mxu0 %v9407_v0  ;;  %8641 = vmatpush3.msra.mxu1 %v9479_v9  ;;  %v9730_v46 = vand.u32 4294901760, %v1927_v41  ;;  %v2921_v58 = vand.u32 4294901760, %v2920_v57  ;;  %v3879_v27 = vsub.f32 %v9873_v19, %v9893_v22  ;;  %v9922_v29 = vand.u32 4294901760, %v9903_v24 }
  0x2d   :  { %8642 = vmatprep.mubr.msk.f32.mxu1 %vm9408_vm4, %v9407_v0  ;;  %8650 = vmatprep.subr.mxu1 %v9407_v0 }
  0x2e   :  { %8618 = vmatmul.mubr.f32.vlgmr.msra.gmra.mxu0 %v1075_v6  ;;  %8643 = vmatmul.mubr.f32.vlgmr.msra.gmra.mxu1 %v9598_v30  ;;  %v1996_v47 = vsub.f32 %v1927_v41, %v9730_v46  ;;  %v2922_v60 = vsub.f32 %v2920_v57, %v2921_v58  ;;  %v3886_v6 = vsub.f32 %v9889_v20, %v9909_v25 }
  0x2f   :  { %8626 = vmatpush3.msra.mxu0 %v9504_v18  ;;  %8627 = vmatprep.mubr.msk.f32.mxu0 %vm9408_vm4, %v9407_v0 }
  0x30   :  { %8635 = vmatprep.subr.mxu0 %v9407_v0  ;;  %8651 = vmatpush3.msra.mxu1 %v9531_v39  ;;  %v2923_v4 = vand.u32 4294901760, %v2922_v60  ;;  %v9940_v32 = vand.u32 4294901760, %v3886_v6 }
  0x31   :  { %8652 = vmatprep.mubr.msk.f32.mxu1 %vm9408_vm4, %v9407_v0  ;;  %8660 = vmatprep.subr.mxu1 %v9407_v0 }
  0x32   :  { %8628 = vmatmul.mubr.f32.vlgmr.msra.gmra.mxu0 %v9616_v37  ;;  %8653 = vmatmul.mubr.f32.vlgmr.msra.gmra.mxu1 %v9655_v61  ;;  %v2386_v37 = vsel %vm69_vm7, %v2385_v44, %v2384_v43 }
  0x33   :  { %8636 = vmatpush3.msra.mxu0 %v9512_v23  ;;  %8637 = vmatprep.mubr.msk.f32.mxu0 %vm9408_vm4, %v9407_v0  ;;  %v2388_v12 = vsel %vm72_vm8, %v2387_v11, %v2386_v37 }
  0x34   :  { %8645 = vmatprep.subr.mxu0 %v9407_v0  ;;  %8661 = vmatpush3.msra.mxu1 %v9479_v9  ;;  %v2389_v48 = vsel %vm74_vm9, %v2388_v12, 0 }
  0x35   :  { %8662 = vmatprep.mubr.msk.f32.mxu1 %vm9408_vm4, %v9407_v0  ;;  %8670 = vmatprep.subr.mxu1 %v9407_v0  ;;  %v9766_v50 = vand.u32 4294901760, %v2389_v48 }
  0x36   :  { %8638 = vmatmul.mubr.f32.vlgmr.msra.gmra.mxu0 %v9598_v30  ;;  %8663 = vmatmul.mubr.f32.vlgmr.msra.gmra.mxu1 %v1535_v38  ;;  %v1997_v30 = vand.u32 4294901760, %v1996_v47 }
  0x37   :  { %8646 = vmatpush3.msra.mxu0 %v9479_v9  ;;  %8647 = vmatprep.mubr.msk.f32.mxu0 %vm9408_vm4, %v9407_v0  ;;  %v2458_v52 = vsub.f32 %v2389_v48, %v9766_v50 }
  0x38   :  { %8655 = vmatprep.subr.mxu0 %v9407_v0  ;;  %8671 = vmatpush3.msra.mxu1 %v9479_v9  ;;  %v1998_v49 = vsub.f32 %v1996_v47, %v1997_v30 }
  0x39   :  { %8672 = vmatprep.mubr.msk.f32.mxu1 %vm9408_vm4, %v9407_v0  ;;  %8680 = vmatprep.subr.mxu1 %v9407_v0  ;;  %v2459_v53 = vand.u32 4294901760, %v2458_v52 }
  0x3a   :  { %8648 = vmatmul.mubr.f32.vlgmr.msra.gmra.mxu0 %v1537_v10  ;;  %8673 = vmatmul.mubr.f32.vlgmr.msra.gmra.mxu1 %v9655_v61  ;;  %v1999_v51 = vand.u32 4294901760, %v1998_v49 }
  0x3b   :  { %8656 = vmatpush3.msra.mxu0 %v9504_v18  ;;  %8657 = vmatprep.mubr.msk.f32.mxu0 %vm9408_vm4, %v9407_v0  ;;  %v2460_v54 = vsub.f32 %v2458_v52, %v2459_v53 }
  0x3c   :  { %8665 = vmatprep.subr.mxu0 %v9407_v0  ;;  %8681 = vmatpush3.msra.mxu1 %v9531_v39 }
  0x3d   :  { %8682 = vmatprep.mubr.msk.f32.mxu1 %vm9408_vm4, %v9407_v0  ;;  %8690 = vmatprep.subr.mxu1 %v9407_v0  ;;  %v2461_v56 = vand.u32 4294901760, %v2460_v54 }
  0x3e   :  { %8658 = vmatmul.mubr.f32.vlgmr.msra.gmra.mxu0 %v1534_v31  ;;  %8683 = vmatmul.mubr.f32.vlgmr.msra.gmra.mxu1 %v9730_v46  ;;  %v9930_v31 = vand.u32 4294901760, %v3879_v27 }
  0x3f   :  { %8666 = vmatpush3.msra.mxu0 %v9512_v23  ;;  %8667 = vmatprep.mubr.msk.f32.mxu0 %vm9408_vm4, %v9407_v0 }
  0x40   :  { %8675 = vmatprep.subr.mxu0 %v9407_v0  ;;  %8691 = vmatpush3.msra.mxu1 %v9479_v9 }
  0x41   :  { %8692 = vmatprep.mubr.msk.f32.mxu1 %vm9408_vm4, %v9407_v0  ;;  %8700 = vmatprep.subr.mxu1 %v9407_v0 }
  0x42   :  { %8668 = vmatmul.mubr.f32.vlgmr.msra.gmra.mxu0 %v9655_v61  ;;  %8693 = vmatmul.mubr.f32.vlgmr.msra.gmra.mxu1 %v1997_v30  ;;  %v9832_v61 = vand.u32 4294901760, %v9715_v40 }
  0x43   :  { %8676 = vmatpush3.msra.mxu0 %v9479_v9  ;;  %8677 = vmatprep.mubr.msk.f32.mxu0 %vm9408_vm4, %v9407_v0 }
  0x44   :  { %8685 = vmatprep.subr.mxu0 %v9407_v0  ;;  %8701 = vmatpush3.msra.mxu1 %v9479_v9  ;;  %v3382_v8 = vsub.f32 %v9715_v40, %v9832_v61 }
  0x45   :  { %8702 = vmatprep.mubr.msk.f32.mxu1 %vm9408_vm4, %v9407_v0  ;;  %8710 = vmatprep.subr.mxu1 %v9407_v0 }
  0x46   :  { %8678 = vmatmul.mubr.f32.vlgmr.msra.gmra.mxu0 %v1999_v51  ;;  %8703 = vmatmul.mubr.f32.vlgmr.msra.gmra.mxu1 %v9730_v46  ;;  %v3383_v17 = vand.u32 4294901760, %v3382_v8 }
  0x47   :  { %8686 = vmatpush3.msra.mxu0 %v9504_v18  ;;  %8687 = vmatprep.mubr.msk.f32.mxu0 %vm9408_vm4, %v9407_v0 }
  0x48   :  { %8695 = vmatprep.subr.mxu0 %v9407_v0  ;;  %8711 = vmatpush3.msra.mxu1 %v9531_v39  ;;  %v3384_v21 = vsub.f32 %v3382_v8, %v3383_v17 }
  0x49   :  { %8712 = vmatprep.mubr.msk.f32.mxu1 %vm9408_vm4, %v9407_v0  ;;  %8720 = vmatprep.subr.mxu1 %v9407_v0 }
  0x4a   :  { %8688 = vmatmul.mubr.f32.vlgmr.msra.gmra.mxu0 %v1996_v47  ;;  %8713 = vmatmul.mubr.f32.vlgmr.msra.gmra.mxu1 %v9766_v50  ;;  %v3385_v26 = vand.u32 4294901760, %v3384_v21 }
  0x4b   :  { %8696 = vmatpush3.msra.mxu0 %v9512_v23  ;;  %8697 = vmatprep.mubr.msk.f32.mxu0 %vm9408_vm4, %v9407_v0 }
  0x4c   :  { %8705 = vmatprep.subr.mxu0 %v9407_v0  ;;  %8721 = vmatpush3.msra.mxu1 %v9479_v9 }
  0x4d   :  { %8722 = vmatprep.mubr.msk.f32.mxu1 %vm9408_vm4, %v9407_v0  ;;  %8730 = vmatprep.subr.mxu1 %v9407_v0 }
  0x4e   :  { %8698 = vmatmul.mubr.f32.vlgmr.msra.gmra.mxu0 %v9730_v46  ;;  %8723 = vmatmul.mubr.f32.vlgmr.msra.gmra.mxu1 %v2459_v53 }
  0x4f   :  { %8706 = vmatpush3.msra.mxu0 %v9479_v9  ;;  %8707 = vmatprep.mubr.msk.f32.mxu0 %vm9408_vm4, %v9407_v0 }
  0x50   :  { %8715 = vmatprep.subr.mxu0 %v9407_v0  ;;  %8731 = vmatpush3.msra.mxu1 %v9479_v9 }
  0x51   :  { %8732 = vmatprep.mubr.msk.f32.mxu1 %vm9408_vm4, %v9407_v0  ;;  %8740 = vmatprep.subr.mxu1 %v9407_v0 }
  0x52   :  { %8708 = vmatmul.mubr.f32.vlgmr.msra.gmra.mxu0 %v2461_v56  ;;  %8733 = vmatmul.mubr.f32.vlgmr.msra.gmra.mxu1 %v9766_v50 }
  0x53   :  { %8716 = vmatpush3.msra.mxu0 %v9504_v18  ;;  %8717 = vmatprep.mubr.msk.f32.mxu0 %vm9408_vm4, %v9407_v0 }
  0x54   :  { %8725 = vmatprep.subr.mxu0 %v9407_v0  ;;  %8741 = vmatpush3.msra.mxu1 %v9531_v39 }
  0x55   :  { %8742 = vmatprep.mubr.msk.f32.mxu1 %vm9408_vm4, %v9407_v0  ;;  %8750 = vmatprep.subr.mxu1 %v9407_v0 }
  0x56   :  { %8718 = vmatmul.mubr.f32.vlgmr.msra.gmra.mxu0 %v2458_v52  ;;  %8743 = vmatmul.mubr.f32.vlgmr.msra.gmra.mxu1 %v9797_v55 }
  0x57   :  { %8726 = vmatpush3.msra.mxu0 %v9512_v23  ;;  %8727 = vmatprep.mubr.msk.f32.mxu0 %vm9408_vm4, %v9407_v0 }
  0x58   :  { %8735 = vmatprep.subr.mxu0 %v9407_v0  ;;  %8751 = vmatpush3.msra.mxu1 %v9479_v9 }
  0x59   :  { %8752 = vmatprep.mubr.msk.f32.mxu1 %vm9408_vm4, %v9407_v0  ;;  %8760 = vmatprep.subr.mxu1 %v9407_v0 }
  0x5a   :  { %8728 = vmatmul.mubr.f32.vlgmr.msra.gmra.mxu0 %v9766_v50  ;;  %8753 = vmatmul.mubr.f32.vlgmr.msra.gmra.mxu1 %v2921_v58 }
  0x5b   :  { %8736 = vmatpush3.msra.mxu0 %v9479_v9  ;;  %8737 = vmatprep.mubr.msk.f32.mxu0 %vm9408_vm4, %v9407_v0 }
  0x5c   :  { %8745 = vmatprep.subr.mxu0 %v9407_v0  ;;  %8761 = vmatpush3.msra.mxu1 %v9479_v9 }
  0x5d   :  { %8762 = vmatprep.mubr.msk.f32.mxu1 %vm9408_vm4, %v9407_v0  ;;  %8770 = vmatprep.subr.mxu1 %v9407_v0 }
  0x5e   :  { %8738 = vmatmul.mubr.f32.vlgmr.msra.gmra.mxu0 %v2923_v4  ;;  %8763 = vmatmul.mubr.f32.vlgmr.msra.gmra.mxu1 %v9797_v55 }
  0x5f   :  { %8746 = vmatpush3.msra.mxu0 %v9504_v18  ;;  %8747 = vmatprep.mubr.msk.f32.mxu0 %vm9408_vm4, %v9407_v0 }
  0x60   :  { %8755 = vmatprep.subr.mxu0 %v9407_v0  ;;  %8771 = vmatpush3.msra.mxu1 %v9531_v39  ;;  %v3872_v39 = vsub.f32 %v9861_v14, %v9881_v5 }
  0x61   :  { %8772 = vmatprep.mubr.msk.f32.mxu1 %vm9408_vm4, %v9407_v0  ;;  %8780 = vmatprep.subr.mxu1 %v9407_v0 }
  0x62   :  { %8748 = vmatmul.mubr.f32.vlgmr.msra.gmra.mxu0 %v2920_v57  ;;  %8773 = vmatmul.mubr.f32.vlgmr.msra.gmra.mxu1 %v9832_v61  ;;  %v9919_v28 = vand.u32 4294901760, %v3872_v39 }
  0x63   :  { %8756 = vmatpush3.msra.mxu0 %v9512_v23  ;;  %8757 = vmatprep.mubr.msk.f32.mxu0 %vm9408_vm4, %v9407_v0 }
  0x64   :  { %8765 = vmatprep.subr.mxu0 %v9407_v0  ;;  %8781 = vmatpush3.msra.mxu1 %v9479_v9 }
  0x65   :  { %8782 = vmatprep.mubr.msk.f32.mxu1 %vm9408_vm4, %v9407_v0  ;;  %8790 = vmatprep.subr.mxu1 %v9407_v0 }
  0x66   :  { %8758 = vmatmul.mubr.f32.vlgmr.msra.gmra.mxu0 %v9797_v55  ;;  %8783 = vmatmul.mubr.f32.vlgmr.msra.gmra.mxu1 %v3383_v17 }
  0x67   :  { %8766 = vmatpush3.msra.mxu0 %v9479_v9  ;;  %8767 = vmatprep.mubr.msk.f32.mxu0 %vm9408_vm4, %v9407_v0 }
  0x68   :  { %8775 = vmatprep.subr.mxu0 %v9407_v0  ;;  %8791 = vmatpush3.msra.mxu1 %v9479_v9  ;;  %v3893_v9 = vsub.f32 %v9903_v24, %v9922_v29 }
  0x69   :  { %8792 = vmatprep.mubr.msk.f32.mxu1 %vm9408_vm4, %v9407_v0  ;;  %8806 = vmatprep.subr.mxu1 %v9407_v0 }
  0x6a   :  { %8768 = vmatmul.mubr.f32.vlgmr.msra.gmra.mxu0 %v3385_v26  ;;  %8793 = vmatmul.mubr.f32.vlgmr.msra.gmra.mxu1 %v9832_v61 }
  0x6b   :  { %8776 = vmatpush3.msra.mxu0 %v9504_v18  ;;  %8777 = vmatprep.mubr.msk.f32.mxu0 %vm9408_vm4, %v9407_v0  ;;  %v9950_v18 = vand.u32 4294901760, %v3893_v9 }
  0x6c   :  { %8785 = vmatprep.subr.mxu0 %v9407_v0  ;;  %8807 = vmatpush3.msra.mxu1 %v9919_v28 }
  0x6d   :  { %8808 = vmatprep.subr.mxu1 %v9407_v0  ;;  %8814 = vmatprep.mubr.msk.f32.mxu1 %vm9408_vm4, %v9407_v0 }
  0x6e   :  { %8778 = vmatmul.mubr.f32.vlgmr.msra.gmra.mxu0 %v3382_v8  ;;  %8809 = vmatpush3.msra.mxu1 %v9930_v31 }
  0x6f   :  { %8786 = vmatpush3.msra.mxu0 %v9512_v23  ;;  %8787 = vmatprep.mubr.msk.f32.mxu0 %vm9408_vm4, %v9407_v0 }
  0x70   :  { %8795 = vmatprep.subr.mxu0 %v9407_v0  ;;  %8810 = vmatprep.subr.mxu1 %v9407_v0 }
  0x71   :  { %8811 = vmatpush3.msra.mxu1 %v9940_v32 }
  0x72   :  { %8788 = vmatmul.mubr.f32.vlgmr.msra.gmra.mxu0 %v9832_v61  ;;  %8812 = vmatprep.subr.mxu1 %v9407_v0 }
  0x73   :  { %8796 = vmatpush3.msra.mxu0 %v9842_v1  ;;  %8803 = vmatprep.mubr.msk.f32.mxu0 %vm9408_vm4, %v9407_v0 }
  0x74   :  { %8797 = vmatprep.subr.mxu0 %v9407_v0  ;;  %8813 = vmatpush3.msra.mxu1 %v9950_v18 }
  0x75   :  { %8798 = vmatpush3.msra.mxu0 %v9850_v2  ;;  %8828 = vmatprep.subr.mxu1 %v9407_v0 }
  0x76   :  { %8799 = vmatprep.subr.mxu0 %v9407_v0  ;;  %8815 = vmatmul.mubr.f32.vlgmr.msra.gmra.mxu1 %v9407_v0 }
  0x77   :  { %8800 = vmatpush3.msra.mxu0 %v9866_v15  ;;  %8829 = vmatpush3.msra.mxu1 %v9842_v1 }
  0x78   :  { %8801 = vmatprep.subr.mxu0 %v9407_v0  ;;  %8830 = vmatprep.subr.mxu1 %v9407_v0 }
  0x79   :  { %8802 = vmatpush3.msra.mxu0 %v9883_v16  ;;  %8831 = vmatpush3.msra.mxu1 %v9850_v2 }
  0x7a   :  { %8804 = vmatmul.mubr.f32.vlgmr.msra.gmra.mxu0 %v9407_v0  ;;  %8817 = vmatprep.subr.mxu0 %v9407_v0 }
  0x7b   :  { %8818 = vmatpush3.msra.mxu0 %v9861_v14  ;;  %8832 = vmatprep.subr.mxu1 %v9407_v0 }
  0x7c   :  { %8819 = vmatprep.subr.mxu0 %v9407_v0  ;;  %8833 = vmatpush3.msra.mxu1 %v9866_v15 }
  0x7d   :  { %8820 = vmatpush3.msra.mxu0 %v9873_v19  ;;  %8834 = vmatprep.subr.mxu1 %v9407_v0 }
  0x7e   :  { %8821 = vmatprep.subr.mxu0 %v9407_v0  ;;  %8825 = vmatprep.mubr.msk.f32.mxu0 %vm9408_vm4, %v9407_v0 }
  0x7f   :  { %8822 = vmatpush3.msra.mxu0 %v9889_v20  ;;  %8835 = vmatpush3.msra.mxu1 %v9883_v16 }
  0x80   :  { %8823 = vmatprep.subr.mxu0 %v9407_v0  ;;  %8836 = vmatprep.mubr.msk.f32.mxu1 %vm9408_vm4, %v9407_v0 }
  0x81   :  { %8824 = vmatpush3.msra.mxu0 %v9903_v24  ;;  %8850 = vmatprep.subr.mxu1 %v9407_v0 }
  0x82   :  { %8826 = vmatmul.mubr.f32.vlgmr.msra.gmra.mxu0 %v9407_v0  ;;  %8839 = vmatprep.subr.mxu0 %v9407_v0 }
  0x83   :  { %8837 = vmatmul.mubr.f32.vlgmr.msra.gmra.mxu1 %v9407_v0  ;;  %8840 = vmatpush3.msra.mxu0 %v9881_v5 }
  0x84   :  { %8851 = vmatpush3.msra.mxu1 %v9842_v1  ;;  %8841 = vmatprep.subr.mxu0 %v9407_v0 }
  0x85   :  { %8852 = vmatprep.subr.mxu1 %v9407_v0  ;;  %8842 = vmatpush3.msra.mxu0 %v9893_v22 }
  0x86   :  { %8853 = vmatpush3.msra.mxu1 %v9850_v2  ;;  %8843 = vmatprep.subr.mxu0 %v9407_v0 }
  0x87   :  { %8854 = vmatprep.subr.mxu1 %v9407_v0  ;;  %8844 = vmatpush3.msra.mxu0 %v9909_v25 }
  0x88   :  { %8855 = vmatpush3.msra.mxu1 %v9866_v15  ;;  %8845 = vmatprep.subr.mxu0 %v9407_v0 }
  0x89   :  { %8856 = vmatprep.subr.mxu1 %v9407_v0  ;;  %8846 = vmatpush3.msra.mxu0 %v9922_v29 }
  0x8a   :  { %8847 = vmatprep.mubr.msk.f32.mxu0 %vm9408_vm4, %v9407_v0  ;;  %8857 = vmatpush3.msra.mxu1 %v9883_v16 }
  0x8b   :  { %8858 = vmatprep.mubr.msk.f32.mxu1 %vm9408_vm4, %v9407_v0  ;;  %8848 = vmatmul.mubr.f32.vlgmr.msra.gmra.mxu0 %v9407_v0 }
  0x8c   :  { %8859 = vmatmul.mubr.f32.vlgmr.msra.gmra.mxu1 %v9407_v0  ;;  %8872 = vmatprep.subr.mxu1 %v9407_v0 }
  0x8d   :  { %8873 = vmatpush3.msra.mxu1 %v9919_v28  ;;  %8861 = vmatprep.subr.mxu0 %v9407_v0 }
  0x8e   :  { %8874 = vmatprep.subr.mxu1 %v9407_v0  ;;  %8880 = vmatprep.mubr.msk.f32.mxu1 %vm9408_vm4, %v9407_v0 }
  0x8f   :  { %8875 = vmatpush3.msra.mxu1 %v9930_v31  ;;  %8862 = vmatpush3.msra.mxu0 %v9842_v1 }
  0x90   :  { %8876 = vmatprep.subr.mxu1 %v9407_v0  ;;  %8863 = vmatprep.subr.mxu0 %v9407_v0 }
  0x91   :  { %8877 = vmatpush3.msra.mxu1 %v9940_v32  ;;  %8864 = vmatpush3.msra.mxu0 %v9850_v2 }
  0x92   :  { %8878 = vmatprep.subr.mxu1 %v9407_v0  ;;  %8865 = vmatprep.subr.mxu0 %v9407_v0 }
  0x93   :  { %8879 = vmatpush3.msra.mxu1 %v9950_v18  ;;  %8866 = vmatpush3.msra.mxu0 %v9866_v15 }
  0x94   :  { %8894 = vmatprep.subr.mxu1 %v9407_v0  ;;  %8867 = vmatprep.subr.mxu0 %v9407_v0 }
  0x95   :  { %8868 = vmatpush3.msra.mxu0 %v9883_v16  ;;  %8869 = vmatprep.mubr.msk.f32.mxu0 %vm9408_vm4, %v9407_v0 }
  0x96   :  { %8883 = vmatprep.subr.mxu0 %v9407_v0 }
  0xce   :  { %v229_v23 = vpop.f32.mrf.mxu1 }
  0xd0   :  { %v8564_v33 = vpop.f32.mrf.mxu1 }
  0xd2   :  { %v377_v34 = vpop.f32.mrf.mxu1 }
  0xd4   :  { %v8574_v35 = vpop.f32.mrf.mxu1 }
  0xd6   :  { %v153_v36 = vpop.f32.mrf.mxu0  ;;  %v523_v7 = vpop.f32.mrf.mxu1 }
  0xd7   :  { %v154_v38 = vadd.f32 %v10036_v63, %v153_v36 }
  0xd8   :  { %v8559_v40 = vpop.f32.mrf.mxu0  ;;  %v8584_v41 = vpop.f32.mrf.mxu1 }
  0xd9   :  { %v230_v42 = vadd.f32 %v229_v23, %v154_v38 }
  0xda   :  { %v303_v44 = vpop.f32.mrf.mxu0  ;;  %v691_v45 = vpop.f32.mrf.mxu1 }
  0xdb   :  { %v304_v46 = vadd.f32 %v303_v44, %v230_v42 }
  0xdc   :  { %v8569_v43 = vpop.f32.mrf.mxu0  ;;  %v8594_v11 = vpop.f32.mrf.mxu1 }
  0xdd   :  { %v378_v37 = vadd.f32 %v377_v34, %v304_v46 }
  0xde   :  { %v451_v10 = vpop.f32.mrf.mxu0  ;;  %v839_v47 = vpop.f32.mrf.mxu1 }
  0xdf   :  { %v452_v12 = vadd.f32 %v451_v10, %v378_v37 }
  0xe0   :  { %v8579_v30 = vpop.f32.mrf.mxu0  ;;  %v8604_v48 = vpop.f32.mrf.mxu1 }
  0xe1   :  { %v10039_v49 = vadd.f32 %v523_v7, %v452_v12 }
  0xe2   :  { %v615_v50 = vpop.f32.mrf.mxu0  ;;  %v985_v51 = vpop.f32.mrf.mxu1 }
  0xe3   :  { %v616_v52 = vadd.f32 %v10036_v63, %v615_v50 }
  0xe4   :  { %v8589_v53 = vpop.f32.mrf.mxu0  ;;  %v8614_v54 = vpop.f32.mrf.mxu1 }
  0xe5   :  { %v692_v55 = vadd.f32 %v691_v45, %v616_v52 }
  0xe6   :  { %v765_v56 = vpop.f32.mrf.mxu0  ;;  %v1153_v57 = vpop.f32.mrf.mxu1 }
  0xe7   :  { %v766_v58 = vadd.f32 %v765_v56, %v692_v55 }
  0xe8   :  { %v8599_v59 = vpop.f32.mrf.mxu0  ;;  %v8624_v60 = vpop.f32.mrf.mxu1 }
  0xe9   :  { %v840_v61 = vadd.f32 %v839_v47, %v766_v58 }
  0xea   :  { %v913_v62 = vpop.f32.mrf.mxu0  ;;  %v1301_v4 = vpop.f32.mrf.mxu1 }
  0xeb   :  { %v914_v8 = vadd.f32 %v913_v62, %v840_v61 }
  0xec   :  { %v8609_v13 = vpop.f32.mrf.mxu0  ;;  %v8634_v3 = vpop.f32.mrf.mxu1 }
  0xed   :  { %v10042_v17 = vadd.f32 %v985_v51, %v914_v8 }
  0xee   :  { %v1077_v21 = vpop.f32.mrf.mxu0  ;;  %v1447_v39 = vpop.f32.mrf.mxu1 }
  0xef   :  { %v1078_v26 = vadd.f32 %v10036_v63, %v1077_v21 }
  0xf0   :  { %v8619_v27 = vpop.f32.mrf.mxu0  ;;  %v8644_v6 = vpop.f32.mrf.mxu1 }
  0xf1   :  { %v1154_v9 = vadd.f32 %v1153_v57, %v1078_v26 }
  0xf2   :  { %v1227_v23 = vpop.f32.mrf.mxu0  ;;  %v1615_v33 = vpop.f32.mrf.mxu1 }
  0xf3   :  { %v1228_v34 = vadd.f32 %v1227_v23, %v1154_v9 }
  0xf4   :  { %v8629_v35 = vpop.f32.mrf.mxu0  ;;  %v8654_v36 = vpop.f32.mrf.mxu1 }
  0xf5   :  { %v1302_v7 = vadd.f32 %v1301_v4, %v1228_v34 }
  0xf6   :  { %v1375_v38 = vpop.f32.mrf.mxu0  ;;  %v1763_v40 = vpop.f32.mrf.mxu1 }
  0xf7   :  { %v1376_v41 = vadd.f32 %v1375_v38, %v1302_v7 }
  0xf8   :  { %v8639_v42 = vpop.f32.mrf.mxu0  ;;  %v8664_v44 = vpop.f32.mrf.mxu1 }
  0xf9   :  { %v10045_v45 = vadd.f32 %v1447_v39, %v1376_v41 }
  0xfa   :  { %v1539_v46 = vpop.f32.mrf.mxu0  ;;  %v1909_v43 = vpop.f32.mrf.mxu1 }
  0xfb   :  { %v1540_v11 = vadd.f32 %v10036_v63, %v1539_v46 }
  0xfc   :  { %v8649_v37 = vpop.f32.mrf.mxu0  ;;  %v8674_v10 = vpop.f32.mrf.mxu1 }
  0xfd   :  { %v1616_v47 = vadd.f32 %v1615_v33, %v1540_v11 }
  0xfe   :  { %v1689_v12 = vpop.f32.mrf.mxu0  ;;  %v2077_v30 = vpop.f32.mrf.mxu1 }
  0xff   :  { %v1690_v48 = vadd.f32 %v1689_v12, %v1616_v47 }
 0x100   :  { %v8659_v50 = vpop.f32.mrf.mxu0  ;;  %v8684_v51 = vpop.f32.mrf.mxu1 }
 0x101   :  { %v1764_v52 = vadd.f32 %v1763_v40, %v1690_v48 }
 0x102   :  { %v1837_v53 = vpop.f32.mrf.mxu0  ;;  %v2225_v54 = vpop.f32.mrf.mxu1 }
 0x103   :  { %v1838_v55 = vadd.f32 %v1837_v53, %v1764_v52 }
 0x104   :  { %v8669_v56 = vpop.f32.mrf.mxu0  ;;  %v8694_v57 = vpop.f32.mrf.mxu1 }
 0x105   :  { %v10048_v58 = vadd.f32 %v1909_v43, %v1838_v55 }
 0x106   :  { %v2001_v59 = vpop.f32.mrf.mxu0  ;;  %v2371_v60 = vpop.f32.mrf.mxu1 }
 0x107   :  { %v2002_v61 = vadd.f32 %v10036_v63, %v2001_v59 }
 0x108   :  { %v8679_v62 = vpop.f32.mrf.mxu0  ;;  %v8704_v4 = vpop.f32.mrf.mxu1 }
 0x109   :  { %v2078_v8 = vadd.f32 %v2077_v30, %v2002_v61 }
 0x10a   :  { %v2151_v13 = vpop.f32.mrf.mxu0  ;;  %v2539_v3 = vpop.f32.mrf.mxu1 }
 0x10b   :  { %v2152_v21 = vadd.f32 %v2151_v13, %v2078_v8 }
 0x10c   :  { %v8689_v39 = vpop.f32.mrf.mxu0  ;;  %v8714_v26 = vpop.f32.mrf.mxu1 }
 0x10d   :  { %v2226_v27 = vadd.f32 %v2225_v54, %v2152_v21 }
 0x10e   :  { %v2299_v6 = vpop.f32.mrf.mxu0  ;;  %v2687_v9 = vpop.f32.mrf.mxu1 }
 0x10f   :  { %v2300_v23 = vadd.f32 %v2299_v6, %v2226_v27 }
 0x110   :  { %v8699_v33 = vpop.f32.mrf.mxu0  ;;  %v8724_v34 = vpop.f32.mrf.mxu1 }
 0x111   :  { %v10051_v35 = vadd.f32 %v2371_v60, %v2300_v23 }
 0x112   :  { %v2463_v36 = vpop.f32.mrf.mxu0  ;;  %v2833_v7 = vpop.f32.mrf.mxu1 }
 0x113   :  { %v2464_v38 = vadd.f32 %v10036_v63, %v2463_v36 }
 0x114   :  { %v8709_v40 = vpop.f32.mrf.mxu0  ;;  %v8734_v41 = vpop.f32.mrf.mxu1 }
 0x115   :  { %v2540_v42 = vadd.f32 %v2539_v3, %v2464_v38 }
 0x116   :  { %v2613_v44 = vpop.f32.mrf.mxu0  ;;  %v3001_v46 = vpop.f32.mrf.mxu1 }
 0x117   :  { %v2614_v43 = vadd.f32 %v2613_v44, %v2540_v42 }
 0x118   :  { %v8719_v11 = vpop.f32.mrf.mxu0  ;;  %v8744_v37 = vpop.f32.mrf.mxu1 }
 0x119   :  { %v2688_v10 = vadd.f32 %v2687_v9, %v2614_v43 }
 0x11a   :  { %v2761_v47 = vpop.f32.mrf.mxu0  ;;  %v3149_v12 = vpop.f32.mrf.mxu1 }
 0x11b   :  { %v2762_v30 = vadd.f32 %v2761_v47, %v2688_v10 }
 0x11c   :  { %v8729_v48 = vpop.f32.mrf.mxu0  ;;  %v8754_v50 = vpop.f32.mrf.mxu1 }
 0x11d   :  { %v10054_v51 = vadd.f32 %v2833_v7, %v2762_v30 }
 0x11e   :  { %v2925_v52 = vpop.f32.mrf.mxu0  ;;  %v3295_v53 = vpop.f32.mrf.mxu1 }
 0x11f   :  { %v2926_v54 = vadd.f32 %v10036_v63, %v2925_v52 }
 0x120   :  { %v8739_v55 = vpop.f32.mrf.mxu0  ;;  %v8764_v56 = vpop.f32.mrf.mxu1 }
 0x121   :  { %v3002_v57 = vadd.f32 %v3001_v46, %v2926_v54 }
 0x122   :  { %v3075_v59 = vpop.f32.mrf.mxu0  ;;  %v3463_v60 = vpop.f32.mrf.mxu1 }
 0x123   :  { %v3076_v61 = vadd.f32 %v3075_v59, %v3002_v57 }
 0x124   :  { %v8749_v62 = vpop.f32.mrf.mxu0  ;;  %v8774_v4 = vpop.f32.mrf.mxu1 }
 0x125   :  { %v3150_v8 = vadd.f32 %v3149_v12, %v3076_v61 }
 0x126   :  { %v3223_v13 = vpop.f32.mrf.mxu0  ;;  %v3611_v3 = vpop.f32.mrf.mxu1 }
 0x127   :  { %v3224_v21 = vadd.f32 %v3223_v13, %v3150_v8 }
 0x128   :  { %v8759_v39 = vpop.f32.mrf.mxu0  ;;  %v8784_v26 = vpop.f32.mrf.mxu1 }
 0x129   :  { %v10057_v27 = vadd.f32 %v3295_v53, %v3224_v21 }
 0x12a   :  { %v3387_v6 = vpop.f32.mrf.mxu0  ;;  %v3757_v9 = vpop.f32.mrf.mxu1 }
 0x12b   :  { %v3388_v23 = vadd.f32 %v10036_v63, %v3387_v6 }
 0x12c   :  { %v8769_v33 = vpop.f32.mrf.mxu0  ;;  %v8794_v34 = vpop.f32.mrf.mxu1 }
 0x12d   :  { %v3464_v36 = vadd.f32 %v3463_v60, %v3388_v23 }
 0x12e   :  { %v3537_v7 = vpop.f32.mrf.mxu0 }
 0x12f   :  { %v3538_v38 = vadd.f32 %v3537_v7, %v3464_v36 }
 0x130   :  { %v8779_v40 = vpop.f32.mrf.mxu0 }
 0x131   :  { %v3612_v41 = vadd.f32 %v3611_v3, %v3538_v38 }
 0x132   :  { %v3685_v42 = vpop.f32.mrf.mxu0 }
 0x133   :  { %v3686_v44 = vadd.f32 %v3685_v42, %v3612_v41 }
 0x134   :  { %v8789_v46 = vpop.f32.mrf.mxu0 }
 0x135   :  { %v10060_v43 = vadd.f32 %v3757_v9, %v3686_v44 }
 0x136   :  { %v3931_v11 = vpop.f32.mrf.mxu1 }
 0x138   :  { %v8816_v37 = vpop.f32.mrf.mxu1 }
 0x13a   :  { %v3840_v10 = vpop.f32.mrf.mxu0 }
 0x13b   :  { %v3932_v48 = vadd.f32 %v3931_v11, %v3840_v10 }
 0x13c   :  { %v8805_v47 = vpop.f32.mrf.mxu0 }
 0x142   :  { %v4011_v12 = vpop.f32.mrf.mxu0 }
 0x143   :  { %v4088_v30 = vpop.f32.mrf.mxu1  ;;  %v4012_v52 = vadd.f32 %v4011_v12, %v3932_v48 }
 0x144   :  { %v8827_v63 = vpop.f32.mrf.mxu0 }
 0x145   :  { %v8838_v50 = vpop.f32.mrf.mxu1  ;;  %v4089_v53 = vadd.f32 %v4088_v30, %v4012_v52 }
 0x14b   :  { %v4171_v54 = vpop.f32.mrf.mxu0 }
 0x14c   :  { %v4172_v55 = vadd.f32 %v4171_v54, %v4089_v53  ;;  %v4246_v56 = vpop.f32.mrf.mxu1 }
 0x14d   :  { %v8849_v57 = vpop.f32.mrf.mxu0 }
 0x14e   :  { %v4247_v59 = vadd.f32 %v4246_v56, %v4172_v55  ;;  %v8860_v60 = vpop.f32.mrf.mxu1 }
 0x150   :  { %v4250_v61 = vadd.f32 %v4247_v59, %v10039_v49 }
 0x152   :  { %9391 = vtanh.f32 %v4250_v61 }
 0x15f   :  { %v9392_v62 = vpop.eup %9391 }
 0x160   :  { %v4253_v4 = vsel %vm3761_vm10, %v9392_v62, 0 }
 0x161   :  { %v4324_v8 = vand.u32 4294901760, %v4253_v4 }
 0x163   :  { %v4325_v13 = vsub.f32 %v4253_v4, %v4324_v8  ;;  %8881 = vmatmul.mubr.f32.vlgmr.msra.gmra.mxu1 %v4324_v8 }
 0x164   :  { %8895 = vmatpush3.msra.mxu1 %v9842_v1  ;;  %8902 = vmatprep.mubr.msk.f32.mxu1 %vm9408_vm4, %v9407_v0 }
 0x165   :  { %8896 = vmatprep.subr.mxu1 %v9407_v0  ;;  %v4326_v3 = vand.u32 4294901760, %v4325_v13 }
 0x166   :  { %8897 = vmatpush3.msra.mxu1 %v9850_v2 }
 0x167   :  { %8898 = vmatprep.subr.mxu1 %v9407_v0  ;;  %v4327_v49 = vsub.f32 %v4325_v13, %v4326_v3 }
 0x168   :  { %8899 = vmatpush3.msra.mxu1 %v9866_v15 }
 0x169   :  { %8900 = vmatprep.subr.mxu1 %v9407_v0  ;;  %v4328_v21 = vand.u32 4294901760, %v4327_v49 }
 0x16a   :  { %8901 = vmatpush3.msra.mxu1 %v9883_v16 }
 0x16b   :  { %8903 = vmatmul.mubr.f32.vlgmr.msra.gmra.mxu1 %v4326_v3  ;;  %8916 = vmatprep.subr.mxu1 %v9407_v0 }
 0x16c   :  { %8870 = vmatmul.mubr.f32.vlgmr.msra.gmra.mxu0 %v4328_v21  ;;  %8917 = vmatpush3.msra.mxu1 %v9842_v1 }
 0x16d   :  { %8884 = vmatpush3.msra.mxu0 %v9861_v14  ;;  %8918 = vmatprep.subr.mxu1 %v9407_v0 }
 0x16e   :  { %8885 = vmatprep.subr.mxu0 %v9407_v0  ;;  %8919 = vmatpush3.msra.mxu1 %v9850_v2 }
 0x16f   :  { %8886 = vmatpush3.msra.mxu0 %v9873_v19  ;;  %8920 = vmatprep.subr.mxu1 %v9407_v0 }
 0x170   :  { %8887 = vmatprep.subr.mxu0 %v9407_v0  ;;  %8921 = vmatpush3.msra.mxu1 %v9866_v15 }
 0x171   :  { %8888 = vmatpush3.msra.mxu0 %v9889_v20  ;;  %8922 = vmatprep.subr.mxu1 %v9407_v0 }
 0x172   :  { %8889 = vmatprep.subr.mxu0 %v9407_v0  ;;  %8891 = vmatprep.mubr.msk.f32.mxu0 %vm9408_vm4, %v9407_v0 }
 0x173   :  { %8890 = vmatpush3.msra.mxu0 %v9903_v24  ;;  %8923 = vmatpush3.msra.mxu1 %v9883_v16 }
 0x174   :  { %8924 = vmatprep.mubr.msk.f32.mxu1 %vm9408_vm4, %v9407_v0  ;;  %8892 = vmatmul.mubr.f32.vlgmr.msra.gmra.mxu0 %v4325_v13 }
 0x175   :  { %8905 = vmatprep.subr.mxu0 %v9407_v0  ;;  %8925 = vmatmul.mubr.f32.vlgmr.msra.gmra.mxu1 %v4324_v8 }
 0x176   :  { %8906 = vmatpush3.msra.mxu0 %v9881_v5  ;;  %8913 = vmatprep.mubr.msk.f32.mxu0 %vm9408_vm4, %v9407_v0 }
 0x177   :  { %8907 = vmatprep.subr.mxu0 %v9407_v0  ;;  %8938 = vmatprep.subr.mxu1 %v9407_v0 }
 0x178   :  { %8908 = vmatpush3.msra.mxu0 %v9893_v22  ;;  %8939 = vmatpush3.msra.mxu1 %v9919_v28 }
 0x179   :  { %8909 = vmatprep.subr.mxu0 %v9407_v0  ;;  %8940 = vmatprep.subr.mxu1 %v9407_v0 }
 0x17a   :  { %8910 = vmatpush3.msra.mxu0 %v9909_v25  ;;  %8941 = vmatpush3.msra.mxu1 %v9930_v31 }
 0x17b   :  { %8911 = vmatprep.subr.mxu0 %v9407_v0  ;;  %8942 = vmatprep.subr.mxu1 %v9407_v0 }
 0x17c   :  { %8912 = vmatpush3.msra.mxu0 %v9922_v29  ;;  %8943 = vmatpush3.msra.mxu1 %v9940_v32 }
 0x17d   :  { %8914 = vmatmul.mubr.f32.vlgmr.msra.gmra.mxu0 %v4324_v8  ;;  %8944 = vmatprep.subr.mxu1 %v9407_v0 }
 0x17e   :  { %8945 = vmatpush3.msra.mxu1 %v9950_v18  ;;  %8927 = vmatprep.subr.mxu0 %v9407_v0 }
 0x17f   :  { %8946 = vmatprep.mubr.msk.f32.mxu1 %vm9408_vm4, %v9407_v0  ;;  %8960 = vmatprep.subr.mxu1 %v9407_v0 }
 0x180   :  { %8928 = vmatpush3.msra.mxu0 %v9842_v1  ;;  %8935 = vmatprep.mubr.msk.f32.mxu0 %vm9408_vm4, %v9407_v0 }
 0x181   :  { %8929 = vmatprep.subr.mxu0 %v9407_v0 }
 0x182   :  { %8930 = vmatpush3.msra.mxu0 %v9850_v2 }
 0x183   :  { %8931 = vmatprep.subr.mxu0 %v9407_v0 }
 0x184   :  { %8932 = vmatpush3.msra.mxu0 %v9866_v15 }
 0x185   :  { %8933 = vmatprep.subr.mxu0 %v9407_v0 }
 0x186   :  { %8934 = vmatpush3.msra.mxu0 %v9883_v16 }
 0x187   :  { %8949 = vmatprep.subr.mxu0 %v9407_v0 }
 0x223   :  { %v4421_v39 = vpop.f32.mrf.mxu1 }
 0x225   :  { %v8882_v26 = vpop.f32.mrf.mxu1 }
 0x22b   :  { %v4578_v6 = vpop.f32.mrf.mxu1 }
 0x22c   :  { %v4330_v9 = vpop.f32.mrf.mxu0 }
 0x22d   :  { %v8904_v23 = vpop.f32.mrf.mxu1  ;;  %v4422_v7 = vadd.f32 %v4421_v39, %v4330_v9 }
 0x22e   :  { %v8871_v33 = vpop.f32.mrf.mxu0 }
 0x234   :  { %v4501_v34 = vpop.f32.mrf.mxu0 }
 0x235   :  { %v4736_v36 = vpop.f32.mrf.mxu1  ;;  %v4502_v41 = vadd.f32 %v4501_v34, %v4422_v7 }
 0x236   :  { %v8893_v38 = vpop.f32.mrf.mxu0 }
 0x237   :  { %v8926_v40 = vpop.f32.mrf.mxu1  ;;  %v4579_v42 = vadd.f32 %v4578_v6, %v4502_v41 }
 0x23d   :  { %v4661_v44 = vpop.f32.mrf.mxu0 }
 0x23e   :  { %v4662_v46 = vadd.f32 %v4661_v44, %v4579_v42 }
 0x23f   :  { %v8915_v11 = vpop.f32.mrf.mxu0 }
 0x240   :  { %v4737_v37 = vadd.f32 %v4736_v36, %v4662_v46 }
 0x242   :  { %v4740_v10 = vadd.f32 %v4737_v37, %v10042_v17 }
 0x244   :  { %9393 = vtanh.f32 %v4740_v10 }
 0x251   :  { %v9394_v47 = vpop.eup %9393 }
 0x252   :  { %v4743_v12 = vsel %vm3761_vm10, %v9394_v47, 0 }
 0x253   :  { %v4814_v30 = vand.u32 4294901760, %v4743_v12 }
 0x255   :  { %v4815_v48 = vsub.f32 %v4743_v12, %v4814_v30  ;;  %8947 = vmatmul.mubr.f32.vlgmr.msra.gmra.mxu1 %v4814_v30 }
 0x256   :  { %8961 = vmatpush3.msra.mxu1 %v9842_v1  ;;  %8968 = vmatprep.mubr.msk.f32.mxu1 %vm9408_vm4, %v9407_v0 }
 0x257   :  { %8962 = vmatprep.subr.mxu1 %v9407_v0  ;;  %v4816_v63 = vand.u32 4294901760, %v4815_v48 }
 0x258   :  { %8963 = vmatpush3.msra.mxu1 %v9850_v2 }
 0x259   :  { %8964 = vmatprep.subr.mxu1 %v9407_v0  ;;  %v4817_v17 = vsub.f32 %v4815_v48, %v4816_v63 }
 0x25a   :  { %8965 = vmatpush3.msra.mxu1 %v9866_v15 }
 0x25b   :  { %8966 = vmatprep.subr.mxu1 %v9407_v0  ;;  %v4818_v50 = vand.u32 4294901760, %v4817_v17 }
 0x25c   :  { %8967 = vmatpush3.msra.mxu1 %v9883_v16 }
 0x25d   :  { %8969 = vmatmul.mubr.f32.vlgmr.msra.gmra.mxu1 %v4816_v63  ;;  %8982 = vmatprep.subr.mxu1 %v9407_v0 }
 0x25e   :  { %8936 = vmatmul.mubr.f32.vlgmr.msra.gmra.mxu0 %v4818_v50  ;;  %8983 = vmatpush3.msra.mxu1 %v9842_v1 }
 0x25f   :  { %8950 = vmatpush3.msra.mxu0 %v9861_v14  ;;  %8984 = vmatprep.subr.mxu1 %v9407_v0 }
 0x260   :  { %8951 = vmatprep.subr.mxu0 %v9407_v0  ;;  %8985 = vmatpush3.msra.mxu1 %v9850_v2 }
 0x261   :  { %8952 = vmatpush3.msra.mxu0 %v9873_v19  ;;  %8986 = vmatprep.subr.mxu1 %v9407_v0 }
 0x262   :  { %8953 = vmatprep.subr.mxu0 %v9407_v0  ;;  %8987 = vmatpush3.msra.mxu1 %v9866_v15 }
 0x263   :  { %8954 = vmatpush3.msra.mxu0 %v9889_v20  ;;  %8988 = vmatprep.subr.mxu1 %v9407_v0 }
 0x264   :  { %8955 = vmatprep.subr.mxu0 %v9407_v0  ;;  %8957 = vmatprep.mubr.msk.f32.mxu0 %vm9408_vm4, %v9407_v0 }
 0x265   :  { %8956 = vmatpush3.msra.mxu0 %v9903_v24  ;;  %8989 = vmatpush3.msra.mxu1 %v9883_v16 }
 0x266   :  { %8990 = vmatprep.mubr.msk.f32.mxu1 %vm9408_vm4, %v9407_v0  ;;  %8958 = vmatmul.mubr.f32.vlgmr.msra.gmra.mxu0 %v4815_v48 }
 0x267   :  { %8971 = vmatprep.subr.mxu0 %v9407_v0  ;;  %8991 = vmatmul.mubr.f32.vlgmr.msra.gmra.mxu1 %v4814_v30 }
 0x268   :  { %8972 = vmatpush3.msra.mxu0 %v9881_v5  ;;  %8979 = vmatprep.mubr.msk.f32.mxu0 %vm9408_vm4, %v9407_v0 }
 0x269   :  { %8973 = vmatprep.subr.mxu0 %v9407_v0  ;;  %9004 = vmatprep.subr.mxu1 %v9407_v0 }
 0x26a   :  { %8974 = vmatpush3.msra.mxu0 %v9893_v22  ;;  %9005 = vmatpush3.msra.mxu1 %v9919_v28 }
 0x26b   :  { %8975 = vmatprep.subr.mxu0 %v9407_v0  ;;  %9006 = vmatprep.subr.mxu1 %v9407_v0 }
 0x26c   :  { %8976 = vmatpush3.msra.mxu0 %v9909_v25  ;;  %9007 = vmatpush3.msra.mxu1 %v9930_v31 }
 0x26d   :  { %8977 = vmatprep.subr.mxu0 %v9407_v0  ;;  %9008 = vmatprep.subr.mxu1 %v9407_v0 }
 0x26e   :  { %8978 = vmatpush3.msra.mxu0 %v9922_v29  ;;  %9009 = vmatpush3.msra.mxu1 %v9940_v32 }
 0x26f   :  { %8980 = vmatmul.mubr.f32.vlgmr.msra.gmra.mxu0 %v4814_v30  ;;  %9010 = vmatprep.subr.mxu1 %v9407_v0 }
 0x270   :  { %9011 = vmatpush3.msra.mxu1 %v9950_v18  ;;  %8993 = vmatprep.subr.mxu0 %v9407_v0 }
 0x271   :  { %9012 = vmatprep.mubr.msk.f32.mxu1 %vm9408_vm4, %v9407_v0  ;;  %9026 = vmatprep.subr.mxu1 %v9407_v0 }
 0x272   :  { %8994 = vmatpush3.msra.mxu0 %v9842_v1  ;;  %9001 = vmatprep.mubr.msk.f32.mxu0 %vm9408_vm4, %v9407_v0 }
 0x273   :  { %8995 = vmatprep.subr.mxu0 %v9407_v0 }
 0x274   :  { %8996 = vmatpush3.msra.mxu0 %v9850_v2 }
 0x275   :  { %8997 = vmatprep.subr.mxu0 %v9407_v0 }
 0x276   :  { %8998 = vmatpush3.msra.mxu0 %v9866_v15 }
 0x277   :  { %8999 = vmatprep.subr.mxu0 %v9407_v0 }
 0x278   :  { %9000 = vmatpush3.msra.mxu0 %v9883_v16 }
 0x279   :  { %9015 = vmatprep.subr.mxu0 %v9407_v0 }
 0x315   :  { %v4911_v52 = vpop.f32.mrf.mxu1 }
 0x317   :  { %v8948_v53 = vpop.f32.mrf.mxu1 }
 0x31d   :  { %v5068_v54 = vpop.f32.mrf.mxu1 }
 0x31e   :  { %v4820_v55 = vpop.f32.mrf.mxu0 }
 0x31f   :  { %v8970_v56 = vpop.f32.mrf.mxu1  ;;  %v4912_v61 = vadd.f32 %v4911_v52, %v4820_v55 }
 0x320   :  { %v8937_v57 = vpop.f32.mrf.mxu0 }
 0x326   :  { %v4991_v59 = vpop.f32.mrf.mxu0 }
 0x327   :  { %v5226_v60 = vpop.f32.mrf.mxu1  ;;  %v4992_v8 = vadd.f32 %v4991_v59, %v4912_v61 }
 0x328   :  { %v8959_v62 = vpop.f32.mrf.mxu0 }
 0x329   :  { %v8992_v4 = vpop.f32.mrf.mxu1  ;;  %v5069_v13 = vadd.f32 %v5068_v54, %v4992_v8 }
 0x32f   :  { %v5151_v3 = vpop.f32.mrf.mxu0 }
 0x330   :  { %v5152_v49 = vadd.f32 %v5151_v3, %v5069_v13 }
 0x331   :  { %v8981_v21 = vpop.f32.mrf.mxu0 }
 0x332   :  { %v5227_v39 = vadd.f32 %v5226_v60, %v5152_v49 }
 0x334   :  { %v5230_v26 = vadd.f32 %v5227_v39, %v10045_v45 }
 0x336   :  { %9395 = vtanh.f32 %v5230_v26 }
 0x343   :  { %v9396_v6 = vpop.eup %9395 }
 0x344   :  { %v5233_v9 = vsel %vm3761_vm10, %v9396_v6, 0 }
 0x345   :  { %v5304_v23 = vand.u32 4294901760, %v5233_v9 }
 0x347   :  { %v5305_v33 = vsub.f32 %v5233_v9, %v5304_v23  ;;  %9013 = vmatmul.mubr.f32.vlgmr.msra.gmra.mxu1 %v5304_v23 }
 0x348   :  { %9027 = vmatpush3.msra.mxu1 %v9842_v1  ;;  %9034 = vmatprep.mubr.msk.f32.mxu1 %vm9408_vm4, %v9407_v0 }
 0x349   :  { %9028 = vmatprep.subr.mxu1 %v9407_v0  ;;  %v5306_v34 = vand.u32 4294901760, %v5305_v33 }
 0x34a   :  { %9029 = vmatpush3.msra.mxu1 %v9850_v2 }
 0x34b   :  { %9030 = vmatprep.subr.mxu1 %v9407_v0  ;;  %v5307_v45 = vsub.f32 %v5305_v33, %v5306_v34 }
 0x34c   :  { %9031 = vmatpush3.msra.mxu1 %v9866_v15 }
 0x34d   :  { %9032 = vmatprep.subr.mxu1 %v9407_v0  ;;  %v5308_v36 = vand.u32 4294901760, %v5307_v45 }
 0x34e   :  { %9033 = vmatpush3.msra.mxu1 %v9883_v16 }
 0x34f   :  { %9035 = vmatmul.mubr.f32.vlgmr.msra.gmra.mxu1 %v5306_v34  ;;  %9048 = vmatprep.subr.mxu1 %v9407_v0 }
 0x350   :  { %9002 = vmatmul.mubr.f32.vlgmr.msra.gmra.mxu0 %v5308_v36  ;;  %9049 = vmatpush3.msra.mxu1 %v9842_v1 }
 0x351   :  { %9016 = vmatpush3.msra.mxu0 %v9861_v14  ;;  %9050 = vmatprep.subr.mxu1 %v9407_v0 }
 0x352   :  { %9017 = vmatprep.subr.mxu0 %v9407_v0  ;;  %9051 = vmatpush3.msra.mxu1 %v9850_v2 }
 0x353   :  { %9018 = vmatpush3.msra.mxu0 %v9873_v19  ;;  %9052 = vmatprep.subr.mxu1 %v9407_v0 }
 0x354   :  { %9019 = vmatprep.subr.mxu0 %v9407_v0  ;;  %9053 = vmatpush3.msra.mxu1 %v9866_v15 }
 0x355   :  { %9020 = vmatpush3.msra.mxu0 %v9889_v20  ;;  %9054 = vmatprep.subr.mxu1 %v9407_v0 }
 0x356   :  { %9021 = vmatprep.subr.mxu0 %v9407_v0  ;;  %9023 = vmatprep.mubr.msk.f32.mxu0 %vm9408_vm4, %v9407_v0 }
 0x357   :  { %9022 = vmatpush3.msra.mxu0 %v9903_v24  ;;  %9055 = vmatpush3.msra.mxu1 %v9883_v16 }
 0x358   :  { %9056 = vmatprep.mubr.msk.f32.mxu1 %vm9408_vm4, %v9407_v0  ;;  %9024 = vmatmul.mubr.f32.vlgmr.msra.gmra.mxu0 %v5305_v33 }
 0x359   :  { %9037 = vmatprep.subr.mxu0 %v9407_v0  ;;  %9057 = vmatmul.mubr.f32.vlgmr.msra.gmra.mxu1 %v5304_v23 }
 0x35a   :  { %9038 = vmatpush3.msra.mxu0 %v9881_v5  ;;  %9045 = vmatprep.mubr.msk.f32.mxu0 %vm9408_vm4, %v9407_v0 }
 0x35b   :  { %9039 = vmatprep.subr.mxu0 %v9407_v0  ;;  %9070 = vmatprep.subr.mxu1 %v9407_v0 }
 0x35c   :  { %9040 = vmatpush3.msra.mxu0 %v9893_v22  ;;  %9071 = vmatpush3.msra.mxu1 %v9919_v28 }
 0x35d   :  { %9041 = vmatprep.subr.mxu0 %v9407_v0  ;;  %9072 = vmatprep.subr.mxu1 %v9407_v0 }
 0x35e   :  { %9042 = vmatpush3.msra.mxu0 %v9909_v25  ;;  %9073 = vmatpush3.msra.mxu1 %v9930_v31 }
 0x35f   :  { %9043 = vmatprep.subr.mxu0 %v9407_v0  ;;  %9074 = vmatprep.subr.mxu1 %v9407_v0 }
 0x360   :  { %9044 = vmatpush3.msra.mxu0 %v9922_v29  ;;  %9075 = vmatpush3.msra.mxu1 %v9940_v32 }
 0x361   :  { %9046 = vmatmul.mubr.f32.vlgmr.msra.gmra.mxu0 %v5304_v23  ;;  %9076 = vmatprep.subr.mxu1 %v9407_v0 }
 0x362   :  { %9077 = vmatpush3.msra.mxu1 %v9950_v18  ;;  %9059 = vmatprep.subr.mxu0 %v9407_v0 }
 0x363   :  { %9078 = vmatprep.mubr.msk.f32.mxu1 %vm9408_vm4, %v9407_v0  ;;  %9092 = vmatprep.subr.mxu1 %v9407_v0 }
 0x364   :  { %9060 = vmatpush3.msra.mxu0 %v9842_v1  ;;  %9067 = vmatprep.mubr.msk.f32.mxu0 %vm9408_vm4, %v9407_v0 }
 0x365   :  { %9061 = vmatprep.subr.mxu0 %v9407_v0 }
 0x366   :  { %9062 = vmatpush3.msra.mxu0 %v9850_v2 }
 0x367   :  { %9063 = vmatprep.subr.mxu0 %v9407_v0 }
 0x368   :  { %9064 = vmatpush3.msra.mxu0 %v9866_v15 }
 0x369   :  { %9065 = vmatprep.subr.mxu0 %v9407_v0 }
 0x36a   :  { %9066 = vmatpush3.msra.mxu0 %v9883_v16 }
 0x36b   :  { %9081 = vmatprep.subr.mxu0 %v9407_v0 }
 0x407   :  { %v5401_v7 = vpop.f32.mrf.mxu1 }
 0x409   :  { %v9014_v38 = vpop.f32.mrf.mxu1 }
 0x40f   :  { %v5558_v40 = vpop.f32.mrf.mxu1 }
 0x410   :  { %v5310_v41 = vpop.f32.mrf.mxu0 }
 0x411   :  { %v9036_v42 = vpop.f32.mrf.mxu1  ;;  %v5402_v37 = vadd.f32 %v5401_v7, %v5310_v41 }
 0x412   :  { %v9003_v44 = vpop.f32.mrf.mxu0 }
 0x418   :  { %v5481_v46 = vpop.f32.mrf.mxu0 }
 0x419   :  { %v5716_v11 = vpop.f32.mrf.mxu1  ;;  %v5482_v12 = vadd.f32 %v5481_v46, %v5402_v37 }
 0x41a   :  { %v9025_v10 = vpop.f32.mrf.mxu0 }
 0x41b   :  { %v9058_v47 = vpop.f32.mrf.mxu1  ;;  %v5559_v30 = vadd.f32 %v5558_v40, %v5482_v12 }
 0x421   :  { %v5641_v48 = vpop.f32.mrf.mxu0 }
 0x422   :  { %v5642_v63 = vadd.f32 %v5641_v48, %v5559_v30 }
 0x423   :  { %v9047_v17 = vpop.f32.mrf.mxu0 }
 0x424   :  { %v5717_v50 = vadd.f32 %v5716_v11, %v5642_v63 }
 0x426   :  { %v5720_v52 = vadd.f32 %v5717_v50, %v10048_v58 }
 0x428   :  { %9397 = vtanh.f32 %v5720_v52 }
 0x435   :  { %v9398_v53 = vpop.eup %9397 }
 0x436   :  { %v5723_v54 = vsel %vm3761_vm10, %v9398_v53, 0 }
 0x437   :  { %v5794_v55 = vand.u32 4294901760, %v5723_v54 }
 0x439   :  { %v5795_v56 = vsub.f32 %v5723_v54, %v5794_v55  ;;  %9079 = vmatmul.mubr.f32.vlgmr.msra.gmra.mxu1 %v5794_v55 }
 0x43a   :  { %9093 = vmatpush3.msra.mxu1 %v9842_v1  ;;  %9100 = vmatprep.mubr.msk.f32.mxu1 %vm9408_vm4, %v9407_v0 }
 0x43b   :  { %9094 = vmatprep.subr.mxu1 %v9407_v0  ;;  %v5796_v57 = vand.u32 4294901760, %v5795_v56 }
 0x43c   :  { %9095 = vmatpush3.msra.mxu1 %v9850_v2 }
 0x43d   :  { %9096 = vmatprep.subr.mxu1 %v9407_v0  ;;  %v5797_v58 = vsub.f32 %v5795_v56, %v5796_v57 }
 0x43e   :  { %9097 = vmatpush3.msra.mxu1 %v9866_v15 }
 0x43f   :  { %9098 = vmatprep.subr.mxu1 %v9407_v0  ;;  %v5798_v59 = vand.u32 4294901760, %v5797_v58 }
 0x440   :  { %9099 = vmatpush3.msra.mxu1 %v9883_v16 }
 0x441   :  { %9101 = vmatmul.mubr.f32.vlgmr.msra.gmra.mxu1 %v5796_v57  ;;  %9114 = vmatprep.subr.mxu1 %v9407_v0 }
 0x442   :  { %9068 = vmatmul.mubr.f32.vlgmr.msra.gmra.mxu0 %v5798_v59  ;;  %9115 = vmatpush3.msra.mxu1 %v9842_v1 }
 0x443   :  { %9082 = vmatpush3.msra.mxu0 %v9861_v14  ;;  %9116 = vmatprep.subr.mxu1 %v9407_v0 }
 0x444   :  { %9083 = vmatprep.subr.mxu0 %v9407_v0  ;;  %9117 = vmatpush3.msra.mxu1 %v9850_v2 }
 0x445   :  { %9084 = vmatpush3.msra.mxu0 %v9873_v19  ;;  %9118 = vmatprep.subr.mxu1 %v9407_v0 }
 0x446   :  { %9085 = vmatprep.subr.mxu0 %v9407_v0  ;;  %9119 = vmatpush3.msra.mxu1 %v9866_v15 }
 0x447   :  { %9086 = vmatpush3.msra.mxu0 %v9889_v20  ;;  %9120 = vmatprep.subr.mxu1 %v9407_v0 }
 0x448   :  { %9087 = vmatprep.subr.mxu0 %v9407_v0  ;;  %9089 = vmatprep.mubr.msk.f32.mxu0 %vm9408_vm4, %v9407_v0 }
 0x449   :  { %9088 = vmatpush3.msra.mxu0 %v9903_v24  ;;  %9121 = vmatpush3.msra.mxu1 %v9883_v16 }
 0x44a   :  { %9122 = vmatprep.mubr.msk.f32.mxu1 %vm9408_vm4, %v9407_v0  ;;  %9090 = vmatmul.mubr.f32.vlgmr.msra.gmra.mxu0 %v5795_v56 }
 0x44b   :  { %9103 = vmatprep.subr.mxu0 %v9407_v0  ;;  %9123 = vmatmul.mubr.f32.vlgmr.msra.gmra.mxu1 %v5794_v55 }
 0x44c   :  { %9104 = vmatpush3.msra.mxu0 %v9881_v5  ;;  %9111 = vmatprep.mubr.msk.f32.mxu0 %vm9408_vm4, %v9407_v0 }
 0x44d   :  { %9105 = vmatprep.subr.mxu0 %v9407_v0  ;;  %9136 = vmatprep.subr.mxu1 %v9407_v0 }
 0x44e   :  { %9106 = vmatpush3.msra.mxu0 %v9893_v22  ;;  %9137 = vmatpush3.msra.mxu1 %v9919_v28 }
 0x44f   :  { %9107 = vmatprep.subr.mxu0 %v9407_v0  ;;  %9138 = vmatprep.subr.mxu1 %v9407_v0 }
 0x450   :  { %9108 = vmatpush3.msra.mxu0 %v9909_v25  ;;  %9139 = vmatpush3.msra.mxu1 %v9930_v31 }
 0x451   :  { %9109 = vmatprep.subr.mxu0 %v9407_v0  ;;  %9140 = vmatprep.subr.mxu1 %v9407_v0 }
 0x452   :  { %9110 = vmatpush3.msra.mxu0 %v9922_v29  ;;  %9141 = vmatpush3.msra.mxu1 %v9940_v32 }
 0x453   :  { %9112 = vmatmul.mubr.f32.vlgmr.msra.gmra.mxu0 %v5794_v55  ;;  %9142 = vmatprep.subr.mxu1 %v9407_v0 }
 0x454   :  { %9143 = vmatpush3.msra.mxu1 %v9950_v18  ;;  %9125 = vmatprep.subr.mxu0 %v9407_v0 }
 0x455   :  { %9144 = vmatprep.mubr.msk.f32.mxu1 %vm9408_vm4, %v9407_v0  ;;  %9158 = vmatprep.subr.mxu1 %v9407_v0 }
 0x456   :  { %9126 = vmatpush3.msra.mxu0 %v9842_v1  ;;  %9133 = vmatprep.mubr.msk.f32.mxu0 %vm9408_vm4, %v9407_v0 }
 0x457   :  { %9127 = vmatprep.subr.mxu0 %v9407_v0 }
 0x458   :  { %9128 = vmatpush3.msra.mxu0 %v9850_v2 }
 0x459   :  { %9129 = vmatprep.subr.mxu0 %v9407_v0 }
 0x45a   :  { %9130 = vmatpush3.msra.mxu0 %v9866_v15 }
 0x45b   :  { %9131 = vmatprep.subr.mxu0 %v9407_v0 }
 0x45c   :  { %9132 = vmatpush3.msra.mxu0 %v9883_v16 }
 0x45d   :  { %9147 = vmatprep.subr.mxu0 %v9407_v0 }
 0x4f9   :  { %v5891_v60 = vpop.f32.mrf.mxu1 }
 0x4fb   :  { %v9080_v61 = vpop.f32.mrf.mxu1 }
 0x501   :  { %v6048_v62 = vpop.f32.mrf.mxu1 }
 0x502   :  { %v5800_v4 = vpop.f32.mrf.mxu0 }
 0x503   :  { %v9102_v8 = vpop.f32.mrf.mxu1  ;;  %v5892_v21 = vadd.f32 %v5891_v60, %v5800_v4 }
 0x504   :  { %v9069_v13 = vpop.f32.mrf.mxu0 }
 0x50a   :  { %v5971_v3 = vpop.f32.mrf.mxu0 }
 0x50b   :  { %v6206_v49 = vpop.f32.mrf.mxu1  ;;  %v5972_v6 = vadd.f32 %v5971_v3, %v5892_v21 }
 0x50c   :  { %v9091_v39 = vpop.f32.mrf.mxu0 }
 0x50d   :  { %v9124_v26 = vpop.f32.mrf.mxu1  ;;  %v6049_v9 = vadd.f32 %v6048_v62, %v5972_v6 }
 0x513   :  { %v6131_v23 = vpop.f32.mrf.mxu0 }
 0x514   :  { %v6132_v33 = vadd.f32 %v6131_v23, %v6049_v9 }
 0x515   :  { %v9113_v34 = vpop.f32.mrf.mxu0 }
 0x516   :  { %v6207_v45 = vadd.f32 %v6206_v49, %v6132_v33 }
 0x518   :  { %v6210_v36 = vadd.f32 %v6207_v45, %v10051_v35 }
 0x51a   :  { %9399 = vtanh.f32 %v6210_v36 }
 0x527   :  { %v9400_v7 = vpop.eup %9399 }
 0x528   :  { %v6213_v38 = vsel %vm3761_vm10, %v9400_v7, 0 }
 0x529   :  { %v6284_v40 = vand.u32 4294901760, %v6213_v38 }
 0x52b   :  { %v6285_v41 = vsub.f32 %v6213_v38, %v6284_v40  ;;  %9145 = vmatmul.mubr.f32.vlgmr.msra.gmra.mxu1 %v6284_v40 }
 0x52c   :  { %9159 = vmatpush3.msra.mxu1 %v9842_v1  ;;  %9166 = vmatprep.mubr.msk.f32.mxu1 %vm9408_vm4, %v9407_v0 }
 0x52d   :  { %9160 = vmatprep.subr.mxu1 %v9407_v0  ;;  %v6286_v42 = vand.u32 4294901760, %v6285_v41 }
 0x52e   :  { %9161 = vmatpush3.msra.mxu1 %v9850_v2 }
 0x52f   :  { %9162 = vmatprep.subr.mxu1 %v9407_v0  ;;  %v6287_v35 = vsub.f32 %v6285_v41, %v6286_v42 }
 0x530   :  { %9163 = vmatpush3.msra.mxu1 %v9866_v15 }
 0x531   :  { %9164 = vmatprep.subr.mxu1 %v9407_v0  ;;  %v6288_v44 = vand.u32 4294901760, %v6287_v35 }
 0x532   :  { %9165 = vmatpush3.msra.mxu1 %v9883_v16 }
 0x533   :  { %9167 = vmatmul.mubr.f32.vlgmr.msra.gmra.mxu1 %v6286_v42  ;;  %9180 = vmatprep.subr.mxu1 %v9407_v0 }
 0x534   :  { %9134 = vmatmul.mubr.f32.vlgmr.msra.gmra.mxu0 %v6288_v44  ;;  %9181 = vmatpush3.msra.mxu1 %v9842_v1 }
 0x535   :  { %9148 = vmatpush3.msra.mxu0 %v9861_v14  ;;  %9182 = vmatprep.subr.mxu1 %v9407_v0 }
 0x536   :  { %9149 = vmatprep.subr.mxu0 %v9407_v0  ;;  %9183 = vmatpush3.msra.mxu1 %v9850_v2 }
 0x537   :  { %9150 = vmatpush3.msra.mxu0 %v9873_v19  ;;  %9184 = vmatprep.subr.mxu1 %v9407_v0 }
 0x538   :  { %9151 = vmatprep.subr.mxu0 %v9407_v0  ;;  %9185 = vmatpush3.msra.mxu1 %v9866_v15 }
 0x539   :  { %9152 = vmatpush3.msra.mxu0 %v9889_v20  ;;  %9186 = vmatprep.subr.mxu1 %v9407_v0 }
 0x53a   :  { %9153 = vmatprep.subr.mxu0 %v9407_v0  ;;  %9155 = vmatprep.mubr.msk.f32.mxu0 %vm9408_vm4, %v9407_v0 }
 0x53b   :  { %9154 = vmatpush3.msra.mxu0 %v9903_v24  ;;  %9187 = vmatpush3.msra.mxu1 %v9883_v16 }
 0x53c   :  { %9188 = vmatprep.mubr.msk.f32.mxu1 %vm9408_vm4, %v9407_v0  ;;  %9156 = vmatmul.mubr.f32.vlgmr.msra.gmra.mxu0 %v6285_v41 }
 0x53d   :  { %9169 = vmatprep.subr.mxu0 %v9407_v0  ;;  %9189 = vmatmul.mubr.f32.vlgmr.msra.gmra.mxu1 %v6284_v40 }
 0x53e   :  { %9170 = vmatpush3.msra.mxu0 %v9881_v5  ;;  %9177 = vmatprep.mubr.msk.f32.mxu0 %vm9408_vm4, %v9407_v0 }
 0x53f   :  { %9171 = vmatprep.subr.mxu0 %v9407_v0  ;;  %9202 = vmatprep.subr.mxu1 %v9407_v0 }
 0x540   :  { %9172 = vmatpush3.msra.mxu0 %v9893_v22  ;;  %9203 = vmatpush3.msra.mxu1 %v9919_v28 }
 0x541   :  { %9173 = vmatprep.subr.mxu0 %v9407_v0  ;;  %9204 = vmatprep.subr.mxu1 %v9407_v0 }
 0x542   :  { %9174 = vmatpush3.msra.mxu0 %v9909_v25  ;;  %9205 = vmatpush3.msra.mxu1 %v9930_v31 }
 0x543   :  { %9175 = vmatprep.subr.mxu0 %v9407_v0  ;;  %9206 = vmatprep.subr.mxu1 %v9407_v0 }
 0x544   :  { %9176 = vmatpush3.msra.mxu0 %v9922_v29  ;;  %9207 = vmatpush3.msra.mxu1 %v9940_v32 }
 0x545   :  { %9178 = vmatmul.mubr.f32.vlgmr.msra.gmra.mxu0 %v6284_v40  ;;  %9208 = vmatprep.subr.mxu1 %v9407_v0 }
 0x546   :  { %9209 = vmatpush3.msra.mxu1 %v9950_v18  ;;  %9191 = vmatprep.subr.mxu0 %v9407_v0 }
 0x547   :  { %9210 = vmatprep.mubr.msk.f32.mxu1 %vm9408_vm4, %v9407_v0  ;;  %9224 = vmatprep.subr.mxu1 %v9407_v0 }
 0x548   :  { %9192 = vmatpush3.msra.mxu0 %v9842_v1  ;;  %9199 = vmatprep.mubr.msk.f32.mxu0 %vm9408_vm4, %v9407_v0 }
 0x549   :  { %9193 = vmatprep.subr.mxu0 %v9407_v0 }
 0x54a   :  { %9194 = vmatpush3.msra.mxu0 %v9850_v2 }
 0x54b   :  { %9195 = vmatprep.subr.mxu0 %v9407_v0 }
 0x54c   :  { %9196 = vmatpush3.msra.mxu0 %v9866_v15 }
 0x54d   :  { %9197 = vmatprep.subr.mxu0 %v9407_v0 }
 0x54e   :  { %9198 = vmatpush3.msra.mxu0 %v9883_v16 }
 0x54f   :  { %9213 = vmatprep.subr.mxu0 %v9407_v0 }
 0x5eb   :  { %v6381_v46 = vpop.f32.mrf.mxu1 }
 0x5ed   :  { %v9146_v11 = vpop.f32.mrf.mxu1 }
 0x5f3   :  { %v6538_v37 = vpop.f32.mrf.mxu1 }
 0x5f4   :  { %v6290_v10 = vpop.f32.mrf.mxu0 }
 0x5f5   :  { %v9168_v47 = vpop.f32.mrf.mxu1  ;;  %v6382_v63 = vadd.f32 %v6381_v46, %v6290_v10 }
 0x5f6   :  { %v9135_v12 = vpop.f32.mrf.mxu0 }
 0x5fc   :  { %v6461_v30 = vpop.f32.mrf.mxu0 }
 0x5fd   :  { %v6696_v48 = vpop.f32.mrf.mxu1  ;;  %v6462_v52 = vadd.f32 %v6461_v30, %v6382_v63 }
 0x5fe   :  { %v9157_v17 = vpop.f32.mrf.mxu0 }
 0x5ff   :  { %v9190_v50 = vpop.f32.mrf.mxu1  ;;  %v6539_v53 = vadd.f32 %v6538_v37, %v6462_v52 }
 0x605   :  { %v6621_v54 = vpop.f32.mrf.mxu0 }
 0x606   :  { %v6622_v55 = vadd.f32 %v6621_v54, %v6539_v53 }
 0x607   :  { %v9179_v56 = vpop.f32.mrf.mxu0 }
 0x608   :  { %v6697_v57 = vadd.f32 %v6696_v48, %v6622_v55 }
 0x60a   :  { %v6700_v58 = vadd.f32 %v6697_v57, %v10054_v51 }
 0x60c   :  { %9401 = vtanh.f32 %v6700_v58 }
 0x619   :  { %v9402_v59 = vpop.eup %9401 }
 0x61a   :  { %v6703_v60 = vsel %vm3761_vm10, %v9402_v59, 0 }
 0x61b   :  { %v6774_v61 = vand.u32 4294901760, %v6703_v60 }
 0x61d   :  { %v6775_v62 = vsub.f32 %v6703_v60, %v6774_v61  ;;  %9211 = vmatmul.mubr.f32.vlgmr.msra.gmra.mxu1 %v6774_v61 }
 0x61e   :  { %9225 = vmatpush3.msra.mxu1 %v9842_v1  ;;  %9232 = vmatprep.mubr.msk.f32.mxu1 %vm9408_vm4, %v9407_v0 }
 0x61f   :  { %9226 = vmatprep.subr.mxu1 %v9407_v0  ;;  %v6776_v4 = vand.u32 4294901760, %v6775_v62 }
 0x620   :  { %9227 = vmatpush3.msra.mxu1 %v9850_v2 }
 0x621   :  { %9228 = vmatprep.subr.mxu1 %v9407_v0  ;;  %v6777_v51 = vsub.f32 %v6775_v62, %v6776_v4 }
 0x622   :  { %9229 = vmatpush3.msra.mxu1 %v9866_v15 }
 0x623   :  { %9230 = vmatprep.subr.mxu1 %v9407_v0  ;;  %v6778_v8 = vand.u32 4294901760, %v6777_v51 }
 0x624   :  { %9231 = vmatpush3.msra.mxu1 %v9883_v16 }
 0x625   :  { %9233 = vmatmul.mubr.f32.vlgmr.msra.gmra.mxu1 %v6776_v4  ;;  %9246 = vmatprep.subr.mxu1 %v9407_v0 }
 0x626   :  { %9200 = vmatmul.mubr.f32.vlgmr.msra.gmra.mxu0 %v6778_v8  ;;  %9247 = vmatpush3.msra.mxu1 %v9842_v1 }
 0x627   :  { %9214 = vmatpush3.msra.mxu0 %v9861_v14  ;;  %9248 = vmatprep.subr.mxu1 %v9407_v0 }
 0x628   :  { %9215 = vmatprep.subr.mxu0 %v9407_v0  ;;  %9249 = vmatpush3.msra.mxu1 %v9850_v2 }
 0x629   :  { %9216 = vmatpush3.msra.mxu0 %v9873_v19  ;;  %9250 = vmatprep.subr.mxu1 %v9407_v0 }
 0x62a   :  { %9217 = vmatprep.subr.mxu0 %v9407_v0  ;;  %9251 = vmatpush3.msra.mxu1 %v9866_v15 }
 0x62b   :  { %9218 = vmatpush3.msra.mxu0 %v9889_v20  ;;  %9252 = vmatprep.subr.mxu1 %v9407_v0 }
 0x62c   :  { %9219 = vmatprep.subr.mxu0 %v9407_v0  ;;  %9221 = vmatprep.mubr.msk.f32.mxu0 %vm9408_vm4, %v9407_v0 }
 0x62d   :  { %9220 = vmatpush3.msra.mxu0 %v9903_v24  ;;  %9253 = vmatpush3.msra.mxu1 %v9883_v16 }
 0x62e   :  { %9254 = vmatprep.mubr.msk.f32.mxu1 %vm9408_vm4, %v9407_v0  ;;  %9222 = vmatmul.mubr.f32.vlgmr.msra.gmra.mxu0 %v6775_v62 }
 0x62f   :  { %9235 = vmatprep.subr.mxu0 %v9407_v0  ;;  %9255 = vmatmul.mubr.f32.vlgmr.msra.gmra.mxu1 %v6774_v61 }
 0x630   :  { %9236 = vmatpush3.msra.mxu0 %v9881_v5  ;;  %9243 = vmatprep.mubr.msk.f32.mxu0 %vm9408_vm4, %v9407_v0 }
 0x631   :  { %9237 = vmatprep.subr.mxu0 %v9407_v0  ;;  %9268 = vmatprep.subr.mxu1 %v9407_v0 }
 0x632   :  { %9238 = vmatpush3.msra.mxu0 %v9893_v22  ;;  %9269 = vmatpush3.msra.mxu1 %v9919_v28 }
 0x633   :  { %9239 = vmatprep.subr.mxu0 %v9407_v0  ;;  %9270 = vmatprep.subr.mxu1 %v9407_v0 }
 0x634   :  { %9240 = vmatpush3.msra.mxu0 %v9909_v25  ;;  %9271 = vmatpush3.msra.mxu1 %v9930_v31 }
 0x635   :  { %9241 = vmatprep.subr.mxu0 %v9407_v0  ;;  %9272 = vmatprep.subr.mxu1 %v9407_v0 }
 0x636   :  { %9242 = vmatpush3.msra.mxu0 %v9922_v29  ;;  %9273 = vmatpush3.msra.mxu1 %v9940_v32 }
 0x637   :  { %9244 = vmatmul.mubr.f32.vlgmr.msra.gmra.mxu0 %v6774_v61  ;;  %9274 = vmatprep.subr.mxu1 %v9407_v0 }
 0x638   :  { %9275 = vmatpush3.msra.mxu1 %v9950_v18  ;;  %9257 = vmatprep.subr.mxu0 %v9407_v0 }
 0x639   :  { %9276 = vmatprep.mubr.msk.f32.mxu1 %vm9408_vm4, %v9407_v0  ;;  %9290 = vmatprep.subr.mxu1 %v9407_v0 }
 0x63a   :  { %9258 = vmatpush3.msra.mxu0 %v9842_v1  ;;  %9265 = vmatprep.mubr.msk.f32.mxu0 %vm9408_vm4, %v9407_v0 }
 0x63b   :  { %9259 = vmatprep.subr.mxu0 %v9407_v0 }
 0x63c   :  { %9260 = vmatpush3.msra.mxu0 %v9850_v2 }
 0x63d   :  { %9261 = vmatprep.subr.mxu0 %v9407_v0 }
 0x63e   :  { %9262 = vmatpush3.msra.mxu0 %v9866_v15 }
 0x63f   :  { %9263 = vmatprep.subr.mxu0 %v9407_v0 }
 0x640   :  { %9264 = vmatpush3.msra.mxu0 %v9883_v16 }
 0x641   :  { %9279 = vmatprep.subr.mxu0 %v9407_v0 }
 0x6dd   :  { %v6871_v28 = vpop.f32.mrf.mxu1 }
 0x6df   :  { %v9212_v31 = vpop.f32.mrf.mxu1 }
 0x6e5   :  { %v7028_v32 = vpop.f32.mrf.mxu1 }
 0x6e6   :  { %v6780_v18 = vpop.f32.mrf.mxu0 }
 0x6e7   :  { %v9234_v13 = vpop.f32.mrf.mxu1  ;;  %v6872_v39 = vadd.f32 %v6871_v28, %v6780_v18 }
 0x6e8   :  { %v9201_v3 = vpop.f32.mrf.mxu0 }
 0x6ee   :  { %v6951_v49 = vpop.f32.mrf.mxu0 }
 0x6ef   :  { %v7186_v21 = vpop.f32.mrf.mxu1  ;;  %v6952_v9 = vadd.f32 %v6951_v49, %v6872_v39 }
 0x6f0   :  { %v9223_v26 = vpop.f32.mrf.mxu0 }
 0x6f1   :  { %v9256_v6 = vpop.f32.mrf.mxu1  ;;  %v7029_v23 = vadd.f32 %v7028_v32, %v6952_v9  ;;  %v11_v9 = vstv %s10595_s5 }
 0x6f2   :  { %12 = vst [vmem:[#allocation2] sm:$0x1] %v11_v9 }
 0x6f7   :  { %v7111_v33 = vpop.f32.mrf.mxu0 }
 0x6f8   :  { %v7112_v34 = vadd.f32 %v7111_v33, %v7029_v23 }
 0x6f9   :  { %v9245_v45 = vpop.f32.mrf.mxu0 }
 0x6fa   :  { %v7187_v36 = vadd.f32 %v7186_v21, %v7112_v34 }
 0x6fc   :  { %v7190_v7 = vadd.f32 %v7187_v36, %v10057_v27 }
 0x6fe   :  { %9403 = vtanh.f32 %v7190_v7 }
 0x70b   :  { %v9404_v38 = vpop.eup %9403 }
 0x70c   :  { %v7193_v40 = vsel %vm3761_vm10, %v9404_v38, 0  ;;  %v8188_v38 = vld [vmem:[#allocation2] ss:$0 sm:$0xff] }
 0x70d   :  { %v7264_v41 = vand.u32 4294901760, %v7193_v40 }
 0x70f   :  { %v7265_v42 = vsub.f32 %v7193_v40, %v7264_v41  ;;  %9277 = vmatmul.mubr.f32.vlgmr.msra.gmra.mxu1 %v7264_v41 }
 0x710   :  { %9291 = vmatpush3.msra.mxu1 %v9842_v1  ;;  %9298 = vmatprep.mubr.msk.f32.mxu1 %vm9408_vm4, %v9407_v0 }
 0x711   :  { %9292 = vmatprep.subr.mxu1 %v9407_v0  ;;  %v7266_v35 = vand.u32 4294901760, %v7265_v42 }
 0x712   :  { %9293 = vmatpush3.msra.mxu1 %v9850_v2 }
 0x713   :  { %9294 = vmatprep.subr.mxu1 %v9407_v0  ;;  %v7267_v27 = vsub.f32 %v7265_v42, %v7266_v35 }
 0x714   :  { %9295 = vmatpush3.msra.mxu1 %v9866_v15 }
 0x715   :  { %9296 = vmatprep.subr.mxu1 %v9407_v0  ;;  %v7268_v44 = vand.u32 4294901760, %v7267_v27 }
 0x716   :  { %9297 = vmatpush3.msra.mxu1 %v9883_v16 }
 0x717   :  { %9299 = vmatmul.mubr.f32.vlgmr.msra.gmra.mxu1 %v7266_v35  ;;  %9312 = vmatprep.subr.mxu1 %v9407_v0 }
 0x718   :  { %9266 = vmatmul.mubr.f32.vlgmr.msra.gmra.mxu0 %v7268_v44  ;;  %9313 = vmatpush3.msra.mxu1 %v9842_v1  ;;  %v7685_v1 = vld [vmem:[%s10594_s4 + $0x18] sm:$0xff] }
 0x719   :  { %9280 = vmatpush3.msra.mxu0 %v9861_v14  ;;  %9314 = vmatprep.subr.mxu1 %v9407_v0  ;;  %v7684_v14 = vld [vmem:[%s10594_s4 + $0x10] sm:$0xff] }
 0x71a   :  { %9281 = vmatprep.subr.mxu0 %v9407_v0  ;;  %9315 = vmatpush3.msra.mxu1 %v9850_v2  ;;  %v10483_v2 = vand.u32 4294901760, %v7685_v1 }
 0x71b   :  { %9282 = vmatpush3.msra.mxu0 %v9873_v19  ;;  %9316 = vmatprep.subr.mxu1 %v9407_v0  ;;  %v7682_v19 = vld [vmem:[%s10594_s4] sm:$0xff] }
 0x71c   :  { %9283 = vmatprep.subr.mxu0 %v9407_v0  ;;  %9317 = vmatpush3.msra.mxu1 %v9866_v15  ;;  %v7683_v15 = vld [vmem:[%s10594_s4 + $0x8] sm:$0xff] }
 0x71d   :  { %9284 = vmatpush3.msra.mxu0 %v9889_v20  ;;  %9318 = vmatprep.subr.mxu1 %v9407_v0  ;;  %v10499_v20 = vand.u32 4294901760, %v7683_v15 }
 0x71e   :  { %9285 = vmatprep.subr.mxu0 %v9407_v0  ;;  %9287 = vmatprep.mubr.msk.f32.mxu0 %vm9408_vm4, %v9407_v0 }
 0x71f   :  { %9286 = vmatpush3.msra.mxu0 %v9903_v24  ;;  %9319 = vmatpush3.msra.mxu1 %v9883_v16  ;;  %v10497_v16 = vand.u32 4294901760, %v7684_v14 }
 0x720   :  { %9320 = vmatprep.mubr.msk.f32.mxu1 %vm9408_vm4, %v9407_v0  ;;  %9288 = vmatmul.mubr.f32.vlgmr.msra.gmra.mxu0 %v7265_v42 }
 0x721   :  { %9301 = vmatprep.subr.mxu0 %v9407_v0  ;;  %9321 = vmatmul.mubr.f32.vlgmr.msra.gmra.mxu1 %v7264_v41 }
 0x722   :  { %9302 = vmatpush3.msra.mxu0 %v9881_v5  ;;  %9309 = vmatprep.mubr.msk.f32.mxu0 %vm9408_vm4, %v9407_v0  ;;  %v10495_v5 = vsub.f32 %v7685_v1, %v10483_v2 }
 0x723   :  { %9303 = vmatprep.subr.mxu0 %v9407_v0  ;;  %9334 = vmatprep.subr.mxu1 %v9407_v0 }
 0x724   :  { %9304 = vmatpush3.msra.mxu0 %v9893_v22  ;;  %9342 = vmatprep.mubr.msk.f32.mxu1 %vm9408_vm4, %v9407_v0  ;;  %v10501_v22 = vand.u32 4294901760, %v7682_v19  ;;  %v7802_v24 = vand.u32 4294901760, %v10495_v5 }
 0x725   :  { %9305 = vmatprep.subr.mxu0 %v9407_v0 }
 0x726   :  { %9306 = vmatpush3.msra.mxu0 %v9909_v25  ;;  %v10507_v25 = vsub.f32 %v7684_v14, %v10497_v16  ;;  %v10513_v46 = vsub.f32 %v7682_v19, %v10501_v22  ;;  %v7803_v11 = vsub.f32 %v10495_v5, %v7802_v24 }
 0x727   :  { %9307 = vmatprep.subr.mxu0 %v9407_v0 }
 0x728   :  { %9308 = vmatpush3.msra.mxu0 %v9922_v29  ;;  %v10510_v29 = vsub.f32 %v7683_v15, %v10499_v20  ;;  %v7809_v37 = vand.u32 4294901760, %v10507_v25  ;;  %v7823_v47 = vand.u32 4294901760, %v10513_v46  ;;  %v7804_v12 = vand.u32 4294901760, %v7803_v11 }
 0x729   :  { %9310 = vmatmul.mubr.f32.vlgmr.msra.gmra.mxu0 %v7264_v41  ;;  %9323 = vmatprep.subr.mxu0 %v9407_v0 }
 0x72a   :  { %9331 = vmatprep.mubr.msk.f32.mxu0 %vm9408_vm4, %v9407_v0  ;;  %9324 = vmatpush3.msra.mxu0 %v10483_v2  ;;  %v7816_v10 = vand.u32 4294901760, %v10510_v29  ;;  %v7810_v30 = vsub.f32 %v10507_v25, %v7809_v37  ;;  %v7824_v63 = vsub.f32 %v10513_v46, %v7823_v47 }
 0x72b   :  { %9325 = vmatprep.subr.mxu0 %v9407_v0  ;;  %9335 = vmatpush3.msra.mxu1 %v7804_v12 }
 0x72c   :  { %9326 = vmatpush3.msra.mxu0 %v10497_v16  ;;  %v7817_v48 = vsub.f32 %v10510_v29, %v7816_v10  ;;  %v7811_v17 = vand.u32 4294901760, %v7810_v30  ;;  %9336 = vmatprep.subr.mxu1 %v9407_v0  ;;  %v7825_v52 = vand.u32 4294901760, %v7824_v63 }
 0x72d   :  { %9327 = vmatprep.subr.mxu0 %v9407_v0 }
 0x72e   :  { %9328 = vmatpush3.msra.mxu0 %v10499_v20  ;;  %v7818_v50 = vand.u32 4294901760, %v7817_v48  ;;  %9337 = vmatpush3.msra.mxu1 %v7811_v17 }
 0x72f   :  { %9329 = vmatprep.subr.mxu0 %v9407_v0  ;;  %9338 = vmatprep.subr.mxu1 %v9407_v0 }
 0x730   :  { %9330 = vmatpush3.msra.mxu0 %v10501_v22  ;;  %9339 = vmatpush3.msra.mxu1 %v7818_v50 }
 0x731   :  { %9345 = vmatprep.subr.mxu0 %v9407_v0  ;;  %9340 = vmatprep.subr.mxu1 %v9407_v0 }
 0x732   :  { %9341 = vmatpush3.msra.mxu1 %v7825_v52 }
 0x733   :  { %9356 = vmatprep.subr.mxu1 %v9407_v0 }
 0x7cf   :  { %v7361_v53 = vpop.f32.mrf.mxu1 }
 0x7d1   :  { %v9278_v54 = vpop.f32.mrf.mxu1 }
 0x7d7   :  { %v7518_v55 = vpop.f32.mrf.mxu1 }
 0x7d8   :  { %v7270_v56 = vpop.f32.mrf.mxu0 }
 0x7d9   :  { %v9300_v57 = vpop.f32.mrf.mxu1  ;;  %v7362_v61 = vadd.f32 %v7361_v53, %v7270_v56 }
 0x7da   :  { %v9267_v58 = vpop.f32.mrf.mxu0 }
 0x7e0   :  { %v7441_v59 = vpop.f32.mrf.mxu0 }
 0x7e1   :  { %v7676_v60 = vpop.f32.mrf.mxu1  ;;  %v7442_v51 = vadd.f32 %v7441_v59, %v7362_v61 }
 0x7e2   :  { %v9289_v62 = vpop.f32.mrf.mxu0 }
 0x7e3   :  { %v9322_v4 = vpop.f32.mrf.mxu1  ;;  %v7519_v8 = vadd.f32 %v7518_v55, %v7442_v51 }
 0x7e9   :  { %v7601_v28 = vpop.f32.mrf.mxu0 }
 0x7ea   :  { %v7602_v31 = vadd.f32 %v7601_v28, %v7519_v8 }
 0x7eb   :  { %v9311_v32 = vpop.f32.mrf.mxu0 }
 0x7ec   :  { %v7677_v18 = vadd.f32 %v7676_v60, %v7602_v31 }
 0x7ee   :  { %v7680_v13 = vadd.f32 %v7677_v18, %v10060_v43 }
 0x7f0   :  { %9405 = vtanh.f32 %v7680_v13 }
 0x7fd   :  { %v9406_v3 = vpop.eup %9405 }
 0x7fe   :  { %v7694_v49 = vsel %vm3761_vm10, %v9406_v3, 0 }
 0x7ff   :  { %v7765_v21 = vand.u32 4294901760, %v7694_v49 }
 0x801   :  { %v7766_v39 = vsub.f32 %v7694_v49, %v7765_v21  ;;  %9343 = vmatmul.mubr.f32.vlgmr.msra.gmra.mxu1 %v7765_v21 }
 0x802   :  { %9357 = vmatpush3.msra.mxu1 %v10483_v2  ;;  %9364 = vmatprep.mubr.msk.f32.mxu1 %vm9408_vm4, %v9407_v0 }
 0x803   :  { %9358 = vmatprep.subr.mxu1 %v9407_v0  ;;  %v7767_v26 = vand.u32 4294901760, %v7766_v39 }
 0x804   :  { %9359 = vmatpush3.msra.mxu1 %v10497_v16 }
 0x805   :  { %9360 = vmatprep.subr.mxu1 %v9407_v0  ;;  %v7768_v43 = vsub.f32 %v7766_v39, %v7767_v26 }
 0x806   :  { %9361 = vmatpush3.msra.mxu1 %v10499_v20 }
 0x807   :  { %9362 = vmatprep.subr.mxu1 %v9407_v0  ;;  %v7769_v6 = vand.u32 4294901760, %v7768_v43 }
 0x808   :  { %9363 = vmatpush3.msra.mxu1 %v10501_v22 }
 0x809   :  { %9365 = vmatmul.mubr.f32.vlgmr.msra.gmra.mxu1 %v7767_v26  ;;  %9378 = vmatprep.subr.mxu1 %v9407_v0 }
 0x80a   :  { %9332 = vmatmul.mubr.f32.vlgmr.msra.gmra.mxu0 %v7769_v6  ;;  %9379 = vmatpush3.msra.mxu1 %v10483_v2 }
 0x80b   :  { %9346 = vmatpush3.msra.mxu0 %v10495_v5  ;;  %9380 = vmatprep.subr.mxu1 %v9407_v0 }
 0x80c   :  { %9347 = vmatprep.subr.mxu0 %v9407_v0  ;;  %9381 = vmatpush3.msra.mxu1 %v10497_v16 }
 0x80d   :  { %9348 = vmatpush3.msra.mxu0 %v10507_v25  ;;  %9382 = vmatprep.subr.mxu1 %v9407_v0 }
 0x80e   :  { %9349 = vmatprep.subr.mxu0 %v9407_v0  ;;  %9383 = vmatpush3.msra.mxu1 %v10499_v20 }
 0x80f   :  { %9350 = vmatpush3.msra.mxu0 %v10510_v29  ;;  %9384 = vmatprep.subr.mxu1 %v9407_v0 }
 0x810   :  { %9351 = vmatprep.subr.mxu0 %v9407_v0  ;;  %9353 = vmatprep.mubr.msk.f32.mxu0 %vm9408_vm4, %v9407_v0 }
 0x811   :  { %9352 = vmatpush3.msra.mxu0 %v10513_v46  ;;  %9385 = vmatpush3.msra.mxu1 %v10501_v22 }
 0x812   :  { %9386 = vmatprep.mubr.msk.f32.mxu1 %vm9408_vm4, %v9407_v0  ;;  %9354 = vmatmul.mubr.f32.vlgmr.msra.gmra.mxu0 %v7766_v39 }
 0x813   :  { %9367 = vmatprep.subr.mxu0 %v9407_v0  ;;  %9387 = vmatmul.mubr.f32.vlgmr.msra.gmra.mxu1 %v7765_v21 }
 0x814   :  { %9368 = vmatpush3.msra.mxu0 %v7802_v24  ;;  %9375 = vmatprep.mubr.msk.f32.mxu0 %vm9408_vm4, %v9407_v0 }
 0x815   :  { %9369 = vmatprep.subr.mxu0 %v9407_v0 }
 0x816   :  { %9370 = vmatpush3.msra.mxu0 %v7809_v37 }
 0x817   :  { %9371 = vmatprep.subr.mxu0 %v9407_v0 }
 0x818   :  { %9372 = vmatpush3.msra.mxu0 %v7816_v10 }
 0x819   :  { %9373 = vmatprep.subr.mxu0 %v9407_v0 }
 0x81a   :  { %9374 = vmatpush3.msra.mxu0 %v7823_v47 }
 0x81b   :  { %9376 = vmatmul.mubr.f32.vlgmr.msra.gmra.mxu0 %v7765_v21 }
 0x8c1   :  { %v7862_v23 = vpop.f32.mrf.mxu1 }
 0x8c3   :  { %v9344_v33 = vpop.f32.mrf.mxu1 }
 0x8c9   :  { %v8019_v34 = vpop.f32.mrf.mxu1 }
 0x8ca   :  { %v7771_v45 = vpop.f32.mrf.mxu0 }
 0x8cb   :  { %v9366_v36 = vpop.f32.mrf.mxu1  ;;  %v7772_v40 = vadd.f32 %v8188_v38, %v7771_v45 }
 0x8cc   :  { %v9333_v7 = vpop.f32.mrf.mxu0 }
 0x8cd   :  { %v7863_v0 = vadd.f32 %v7862_v23, %v7772_v40 }
 0x8d2   :  { %v7942_v41 = vpop.f32.mrf.mxu0 }
 0x8d3   :  { %v8177_v42 = vpop.f32.mrf.mxu1  ;;  %v7943_v44 = vadd.f32 %v7942_v41, %v7863_v0 }
 0x8d4   :  { %v9355_v35 = vpop.f32.mrf.mxu0 }
 0x8d5   :  { %v9388_v27 = vpop.f32.mrf.mxu1  ;;  %v8020_v1 = vadd.f32 %v8019_v34, %v7943_v44 }
 0x8db   :  { %v8102_v2 = vpop.f32.mrf.mxu0 }
 0x8dc   :  { %v8103_v14 = vadd.f32 %v8102_v2, %v8020_v1 }
 0x8dd   :  { %v9377_v15 = vpop.f32.mrf.mxu0 }
 0x8de   :  { %v8178_v19 = vadd.f32 %v8177_v42, %v8103_v14 }
 0x8e0   :  { %8182 = vst.msk [vmem:[%s10596_s6] sm:$0xff] %vm8181_vm11, %v8178_v19 }

</bundles_post_ra>
